<compile_context>
chip_gen: v5e
topology: v5e:2x2
jax: 0.10.0
libtpu: 0.0.40
codegen_flags: <defaults>
</compile_context>

<pallas_src>
import math
import functools

import jax
import jax.numpy as jnp
from jax.experimental import pallas as pl
from jax.experimental.pallas import tpu as pltpu


# ---------------------------------------------------------------------------
# shared math helpers (used both inside the Pallas kernel and in the reference)
# ---------------------------------------------------------------------------
def _gelu(x):
    c = math.sqrt(2.0 / math.pi)
    return 0.5 * x * (1.0 + jnp.tanh(c * (x + 0.044715 * x * x * x)))


def _ln(x, g, b, eps=1e-5):
    mean = jnp.mean(x, axis=-1, keepdims=True)
    xc = x - mean
    var = jnp.mean(xc * xc, axis=-1, keepdims=True)
    return xc * jax.lax.rsqrt(var + eps) * g + b


# ---------------------------------------------------------------------------
# fused encoder kernel: one grid step == (one batch tile, one encoder layer)
# ---------------------------------------------------------------------------
def _encoder_kernel(xpad_ref, cw_hbm, cb_ref, ln_g_ref, ln_b_ref,
                    wqkv_ref, bqkv_ref, wo_ref, bo_ref, ln1_g_ref, ln1_b_ref,
                    w1_ref, b1_ref, w2_ref, b2_ref, ln2_g_ref, ln2_b_ref,
                    o_ref, x_scr, *,
                    Bt, T, K, P, G, H, layer_norm_first, eps):
    layer = pl.program_id(1)
    C = o_ref.shape[-1]
    Cg = C // G
    Dh = C // H
    R = Bt * T                          # rows packed into the matmul M dimension
    scale = 1.0 / math.sqrt(Dh)
    bf16 = jnp.bfloat16

    # ---- layer-0 preamble: grouped pos-conv (im2col) + GELU + residual (+ LN) ----
    # conv_w lives in HBM (memory_space=pl.ANY); it is DMA'd into a scoped VMEM
    # buffer only here, so it never occupies pipeline (double) buffers.
    @pl.when(layer == 0)
    def _init():
        def conv_and_residual(cw_vmem):
            pltpu.sync_copy(cw_hbm, cw_vmem)                 # (G, K*Cg, Cg) bf16
            xp = xpad_ref[...]                               # (Bt, T+K-1, C) f32
            xres = xp[:, P:P + T, :].reshape(R, C)           # == original x (f32)
            xpb = xp.astype(bf16)
            parts = []
            for g in range(G):
                cs = g * Cg
                # per-group im2col slab (R, K*Cg): contraction is K*Cg wide
                slab = jnp.concatenate(
                    [xpb[:, k:k + T, cs:cs + Cg].reshape(R, Cg) for k in range(K)],
                    axis=-1)
                parts.append(jnp.dot(slab, cw_vmem[g],
                                     preferred_element_type=jnp.float32))
            conv = jnp.concatenate(parts, axis=-1)           # (R, C) f32, one store
            h0 = xres + _gelu(conv + cb_ref[...])
            if not layer_norm_first:                         # static flag
                h0 = _ln(h0, ln_g_ref[...], ln_b_ref[...], eps)
            x_scr[...] = h0
        pl.run_scoped(conv_and_residual, pltpu.VMEM((G, K * Cg, Cg), bf16))

    x = x_scr[...]                                           # (R, C) f32 carry

    # --------------------------- multi-head attention ---------------------------
    xb = x.astype(bf16)
    qkv = jnp.dot(xb, wqkv_ref[0], preferred_element_type=jnp.float32) + bqkv_ref[0]
    q = (qkv[:, :C] * scale).reshape(Bt, T, C).astype(bf16)
    k = qkv[:, C:2 * C].reshape(Bt, T, C).astype(bf16)
    v = qkv[:, 2 * C:].reshape(Bt, T, C).astype(bf16)
    heads = []
    for h in range(H):
        hs = h * Dh
        s = jnp.einsum("bqd,bkd->bqk", q[:, :, hs:hs + Dh], k[:, :, hs:hs + Dh],
                       preferred_element_type=jnp.float32)
        s = s - jnp.max(s, axis=-1, keepdims=True)
        p = jnp.exp(s)
        p = (p * pl.reciprocal(jnp.sum(p, axis=-1, keepdims=True),
                               approx=True)).astype(bf16)
        heads.append(jnp.einsum("bqk,bkd->bqd", p, v[:, :, hs:hs + Dh],
                                preferred_element_type=jnp.float32).astype(bf16))
    # single lane-dense context value -> ONE fused bf16 output projection
    ctx = jnp.concatenate(heads, axis=-1).reshape(R, C)
    attn = jnp.dot(ctx, wo_ref[0], preferred_element_type=jnp.float32) + bo_ref[0]
    x = _ln(x + attn, ln1_g_ref[0], ln1_b_ref[0], eps)

    # ----------------------------------- FFN ------------------------------------
    h1 = _gelu(jnp.dot(x.astype(bf16), w1_ref[0],
                       preferred_element_type=jnp.float32) + b1_ref[0])
    y = jnp.dot(h1.astype(bf16), w2_ref[0],
                preferred_element_type=jnp.float32) + b2_ref[0]
    x = _ln(x + y, ln2_g_ref[0], ln2_b_ref[0], eps)
    x_scr[...] = x

    # ---- output write: only after the LAST layer (output block index is
    # constant over the layer axis, so HBM writeback is once per batch tile;
    # gating also removes the L-1 wasted per-layer VMEM stores). ----
    @pl.when(layer == pl.num_programs(1) - 1)
    def _final():
        xf = _ln(x, ln_g_ref[...], ln_b_ref[...], eps) if layer_norm_first else x
        o_ref[...] = xf.reshape(Bt, T, C).astype(o_ref.dtype)


# ---------------------------------------------------------------------------
# wrapper: build specs, grid, scratch and invoke the single pallas_call
# ---------------------------------------------------------------------------
def _pick_batch_tile(B, T, target_rows=512):
    """Largest divisor of B whose tile stays under ~target_rows matmul rows
    (amortizes per-layer weight DMA and per-step overhead); then prefer an even
    number of tiles -- v7x runs the "parallel" batch axis on 2 TensorCores --
    as long as that costs at most 2x in rows per tile."""
    divs = [d for d in range(1, B + 1) if B % d == 0]
    fits = [d for d in divs if d * T <= max(target_rows, T)]
    bt = max(fits) if fits else 1
    if (B // bt) % 2 == 1:
        even = [d for d in (fits or divs)
                if (B // d) % 2 == 0 and d * T * 2 >= bt * T]
        if even:
            bt = max(even)
    return bt


def transformer_encoder_forward(x, params, cfg):
    B, T, C = x.shape
    K = cfg["conv_pos"]
    P = K // 2
    G = cfg["conv_groups"]
    H = cfg["n_heads"]
    L = cfg["n_layers"]
    lnf = cfg["layer_norm_first"]

    Bt = _pick_batch_tile(B, T)
    nb = B // Bt
    Tp = T + K - 1
    R = Bt * T

    # SamePad(K): pad P on the left, K-1-P on the right, keep the first T outputs.
    x_pad = jnp.pad(x, ((0, 0), (P, K - 1 - P), (0, 0)))

    kernel = functools.partial(
        _encoder_kernel, Bt=Bt, T=T, K=K, P=P, G=G, H=H,
        layer_norm_first=lnf, eps=1e-5)

    def rep(arr):            # shared small weights: constant block index -> resident
        nd = arr.ndim
        return pl.BlockSpec(arr.shape, lambda b, l, _n=nd: (0,) * _n)

    def per_layer(arr):      # stacked (L, ...) weights: prefetched per layer
        nd = arr.ndim
        return pl.BlockSpec((1,) + arr.shape[1:],
                            lambda b, l, _n=nd: (l,) + (0,) * (_n - 1))

    in_specs = [
        pl.BlockSpec((Bt, Tp, C), lambda b, l: (b, 0, 0)),    # padded input
        pl.BlockSpec(memory_space=pl.ANY),                    # conv_w: manual DMA @ layer 0
        rep(params["conv_b"]), rep(params["ln_g"]), rep(params["ln_b"]),
        per_layer(params["wqkv"]), per_layer(params["bqkv"]),
        per_layer(params["wo"]), per_layer(params["bo"]),
        per_layer(params["ln1_g"]), per_layer(params["ln1_b"]),
        per_layer(params["w1"]), per_layer(params["b1"]),
        per_layer(params["w2"]), per_layer(params["b2"]),
        per_layer(params["ln2_g"]), per_layer(params["ln2_b"]),
    ]
    out_specs = pl.BlockSpec((Bt, T, C), lambda b, l: (b, 0, 0))

    grid_spec = pltpu.PrefetchScalarGridSpec(
        num_scalar_prefetch=0,
        grid=(nb, L),
        in_specs=in_specs,
        out_specs=out_specs,
        scratch_shapes=[pltpu.VMEM((R, C), jnp.float32)],     # f32 activation carry
    )
    return pl.pallas_call(
        kernel,
        grid_spec=grid_spec,
        out_shape=jax.ShapeDtypeStruct((B, T, C), x.dtype),
        compiler_params=pltpu.CompilerParams(
            dimension_semantics=("parallel", "arbitrary"),
            vmem_limit_bytes=64 * 1024 * 1024),               # explicit v7x-sized budget
    )(x_pad,
      params["conv_w"], params["conv_b"], params["ln_g"], params["ln_b"],
      params["wqkv"], params["bqkv"], params["wo"], params["bo"],
      params["ln1_g"], params["ln1_b"], params["w1"], params["b1"],
      params["w2"], params["b2"], params["ln2_g"], params["ln2_b"])


# ---------------------------------------------------------------------------
# Parameter init (mirrors TransformerEncoder.__init__ + init_bert_params),
# stored in the stacked / grouped / bf16 layout the fused kernel consumes.
# ---------------------------------------------------------------------------
def init_params(key, cfg):
    C, K, G = cfg["embed_dim"], cfg["conv_pos"], cfg["conv_groups"]
    F, L = cfg["ffn_dim"], cfg["n_layers"]
    Cg = C // G
    bf16 = jnp.bfloat16

    keys = jax.random.split(key, 1 + 6 * L)
    kit = iter(keys)

    # positional conv: weight (C_out, C_in/G, K) ~ N(0, sqrt(4/(K*C))), bias 0,
    # then weight_norm(dim=2): w = g * v / ||v||  (== v at init).
    std_conv = math.sqrt(4.0 / (K * C))
    v = std_conv * jax.random.normal(next(kit), (C, Cg, K), jnp.float32)
    gnorm = jnp.sqrt(jnp.sum(v * v, axis=(0, 1), keepdims=True))
    w = gnorm * v / jnp.maximum(gnorm, 1e-12)
    # im2col layout (G, K*Cg_in, Cg_out): conv_w[g, k*Cg+i, o] = w[g*Cg+o, i, k]
    conv_w = jnp.transpose(w.reshape(G, Cg, Cg, K), (0, 3, 2, 1)).reshape(G, K * Cg, Cg)

    def lin(k, din, dout):
        # init_bert_params: weight ~ N(0, 0.02), bias = 0; stored transposed (y = x @ W)
        return 0.02 * jax.random.normal(k, (din, dout), jnp.float32)

    wqkv, wo, w1, w2 = [], [], [], []
    for _ in range(L):
        wq = lin(next(kit), C, C)
        wk = lin(next(kit), C, C)
        wv = lin(next(kit), C, C)
        wqkv.append(jnp.concatenate([wq, wk, wv], axis=1))   # fused QKV (C, 3C)
        wo.append(lin(next(kit), C, C))
        w1.append(lin(next(kit), C, F))
        w2.append(lin(next(kit), F, C))

    z = lambda *s: jnp.zeros(s, jnp.float32)
    o = lambda *s: jnp.ones(s, jnp.float32)
    return dict(
        conv_w=conv_w.astype(bf16), conv_b=z(1, C),
        ln_g=o(1, C), ln_b=z(1, C),                 # encoder-level LayerNorm
        wqkv=jnp.stack(wqkv).astype(bf16), bqkv=z(L, 1, 3 * C),
        wo=jnp.stack(wo).astype(bf16), bo=z(L, 1, C),
        ln1_g=o(L, 1, C), ln1_b=z(L, 1, C),
        w1=jnp.stack(w1).astype(bf16), b1=z(L, 1, F),
        w2=jnp.stack(w2).astype(bf16), b2=z(L, 1, C),
        ln2_g=o(L, 1, C), ln2_b=z(L, 1, C),
    )


# ---------------------------------------------------------------------------
# pure-JAX reference (f32 math; uses the same bf16-rounded weights, upcast)
# ---------------------------------------------------------------------------
def reference_forward(x, params, cfg):
    B, T, C = x.shape
    K = cfg["conv_pos"]
    P = K // 2
    G, H, L = cfg["conv_groups"], cfg["n_heads"], cfg["n_layers"]
    Cg, Dh = C // G, C // H
    f32 = lambda a: a.astype(jnp.float32)

    xp = jnp.pad(x, ((0, 0), (P, K - 1 - P), (0, 0)))
    xp_g = xp.reshape(B, T + K - 1, G, Cg)
    cw = f32(params["conv_w"]).reshape(G, K, Cg, Cg)          # [g, k, i, o]
    conv = sum(jnp.einsum("btgi,gio->btgo", xp_g[:, k:k + T], cw[:, k])
               for k in range(K)).reshape(B, T, C)
    x = x + _gelu(conv + params["conv_b"])
    if not cfg["layer_norm_first"]:
        x = _ln(x, params["ln_g"], params["ln_b"])
    for l in range(L):
        qkv = x @ f32(params["wqkv"][l]) + params["bqkv"][l]
        q, k_, v = qkv[..., :C], qkv[..., C:2 * C], qkv[..., 2 * C:]
        qh = q.reshape(B, T, H, Dh)
        kh = k_.reshape(B, T, H, Dh)
        vh = v.reshape(B, T, H, Dh)
        s = jnp.einsum("bqhd,bkhd->bhqk", qh, kh) / math.sqrt(Dh)
        p = jax.nn.softmax(s, axis=-1)
        o = jnp.einsum("bhqk,bkhd->bqhd", p, vh).reshape(B, T, C)
        x = _ln(x + o @ f32(params["wo"][l]) + params["bo"][l],
                params["ln1_g"][l], params["ln1_b"][l])
        h = _gelu(x @ f32(params["w1"][l]) + params["b1"][l])
        x = _ln(x + h @ f32(params["w2"][l]) + params["b2"][l],
                params["ln2_g"][l], params["ln2_b"][l])
    if cfg["layer_norm_first"]:
        x = _ln(x, params["ln_g"], params["ln_b"])
    return x


# ---------------------------------------------------------------------------
if __name__ == "__main__":
    cfg = dict(
        embed_dim=32,        # args.encoder_embed_dim
        conv_pos=4,          # args.conv_pos
        conv_groups=4,       # args.conv_pos_groups
        n_layers=2,          # args.encoder_layers
        n_heads=4,           # args.encoder_attention_heads
        ffn_dim=64,          # args.encoder_ffn_embed_dim
        layer_norm_first=False,
    )
    B, T = 2, 8

    root = jax.random.PRNGKey(0)
    k_param, k_x = jax.random.split(root)
    params = init_params(k_param, cfg)
    x = jax.random.normal(k_x, (B, T, cfg["embed_dim"]), jnp.float32)

    y = transformer_encoder_forward(x, params, cfg)
    y = jax.block_until_ready(y)

    y_ref = reference_forward(x, params, cfg)
    assert y.shape == (B, T, cfg["embed_dim"])
    assert bool(jnp.all(jnp.isfinite(y)))
    # 3e-2 budget: identical weights (bf16-rounded in both paths); the kernel
    # additionally rounds matmul activations to bf16 and uses the EUP
    # approximate reciprocal in softmax.
    err = float(jnp.max(jnp.abs(y - y_ref)))
    assert err < 3e-2, f"mismatch vs reference: max|diff|={err}"

    print("KERNEL_OK")
</pallas_src>

<mosaic_0001>
module attributes {stable_mosaic.version = 11 : i64} {
  func.func @_encoder_kernel(%arg0: i32, %arg1: i32, %arg2: memref<1x11x32xf32, #tpu.memory_space<vmem>>, %arg3: memref<4x32x8xbf16, #tpu.memory_space<any>>, %arg4: memref<1x32xf32, #tpu.memory_space<vmem>>, %arg5: memref<1x32xf32, #tpu.memory_space<vmem>>, %arg6: memref<1x32xf32, #tpu.memory_space<vmem>>, %arg7: memref<1x32x96xbf16, #tpu.memory_space<vmem>>, %arg8: memref<1x1x96xf32, #tpu.memory_space<vmem>>, %arg9: memref<1x32x32xbf16, #tpu.memory_space<vmem>>, %arg10: memref<1x1x32xf32, #tpu.memory_space<vmem>>, %arg11: memref<1x1x32xf32, #tpu.memory_space<vmem>>, %arg12: memref<1x1x32xf32, #tpu.memory_space<vmem>>, %arg13: memref<1x32x64xbf16, #tpu.memory_space<vmem>>, %arg14: memref<1x1x64xf32, #tpu.memory_space<vmem>>, %arg15: memref<1x64x32xbf16, #tpu.memory_space<vmem>>, %arg16: memref<1x1x32xf32, #tpu.memory_space<vmem>>, %arg17: memref<1x1x32xf32, #tpu.memory_space<vmem>>, %arg18: memref<1x1x32xf32, #tpu.memory_space<vmem>>, %arg19: memref<1x8x32xf32, #tpu.memory_space<vmem>>, %arg20: memref<8x32xf32, #tpu.memory_space<vmem>>) attributes {dimension_semantics = [#tpu.dimension_semantics<parallel>, #tpu.dimension_semantics<arbitrary>], iteration_bounds = array<i64: 2, 2>, scalar_prefetch = 0 : i64, scratch_operands = 1 : i64, tpu.core_type = #tpu.core_type<tc>, window_params = [{transform_indices = @transform_0, window_bounds = array<i64: 1, 11, 32>}, {}, {pipeline_mode = #tpu.pipeline_mode<synchronous>, transform_indices = @transform_2, window_bounds = array<i64: 1, 32>}, {pipeline_mode = #tpu.pipeline_mode<synchronous>, transform_indices = @transform_3, window_bounds = array<i64: 1, 32>}, {pipeline_mode = #tpu.pipeline_mode<synchronous>, transform_indices = @transform_4, window_bounds = array<i64: 1, 32>}, {transform_indices = @transform_5, window_bounds = array<i64: 1, 32, 96>}, {transform_indices = @transform_6, window_bounds = array<i64: 1, 1, 96>}, {transform_indices = @transform_7, window_bounds = array<i64: 1, 32, 32>}, {transform_indices = @transform_8, window_bounds = array<i64: 1, 1, 32>}, {transform_indices = @transform_9, window_bounds = array<i64: 1, 1, 32>}, {transform_indices = @transform_10, window_bounds = array<i64: 1, 1, 32>}, {transform_indices = @transform_11, window_bounds = array<i64: 1, 32, 64>}, {transform_indices = @transform_12, window_bounds = array<i64: 1, 1, 64>}, {transform_indices = @transform_13, window_bounds = array<i64: 1, 64, 32>}, {transform_indices = @transform_14, window_bounds = array<i64: 1, 1, 32>}, {transform_indices = @transform_15, window_bounds = array<i64: 1, 1, 32>}, {transform_indices = @transform_16, window_bounds = array<i64: 1, 1, 32>}, {transform_indices = @transform_17, window_bounds = array<i64: 1, 8, 32>}]} {
    %c0_i32 = arith.constant 0 : i32
    %0 = arith.cmpi eq, %arg1, %c0_i32 : i32
    %1 = arith.extui %0 : i1 to i32
    %c0_i32_0 = arith.constant 0 : i32
    %2 = arith.cmpi ne, %1, %c0_i32_0 : i32
    scf.if %2 {
      "tpu.region"() ({
        %alloca = memref.alloca() : memref<4x32x8xbf16, #tpu.memory_space<vmem>>
        "tpu.region"() ({
          %276 = tpu.sem_alloc : memref<!tpu.dma_semaphore, #tpu.memory_space<semaphore_mem>>
          tpu.enqueue_dma source(%arg3 : memref<4x32x8xbf16, #tpu.memory_space<any>>) target(%alloca : memref<4x32x8xbf16, #tpu.memory_space<vmem>>) target_semaphore(%276 : memref<!tpu.dma_semaphore, #tpu.memory_space<semaphore_mem>>)
          tpu.wait_dma2 semaphore(%276 : memref<!tpu.dma_semaphore, #tpu.memory_space<semaphore_mem>>) src(%arg3 : memref<4x32x8xbf16, #tpu.memory_space<any>>) dst(%alloca : memref<4x32x8xbf16, #tpu.memory_space<vmem>>)
          tpu.yield
        }) : () -> ()
        %c0_75 = arith.constant 0 : index
        %c0_76 = arith.constant 0 : index
        %c0_77 = arith.constant 0 : index
        %183 = vector.load %arg2[%c0_75, %c0_76, %c0_77] : memref<1x11x32xf32, #tpu.memory_space<vmem>>, vector<1x11x32xf32>
        %184 = vector.extract_strided_slice %183 {offsets = [0, 2, 0], sizes = [1, 8, 32], strides = [1, 1, 1]} : vector<1x11x32xf32> to vector<1x8x32xf32>
        %185 = vector.shape_cast %184 : vector<1x8x32xf32> to vector<8x32xf32>
        %186 = arith.truncf %183 : vector<1x11x32xf32> to vector<1x11x32xbf16>
        %187 = vector.extract_strided_slice %186 {offsets = [0, 0, 0], sizes = [1, 8, 8], strides = [1, 1, 1]} : vector<1x11x32xbf16> to vector<1x8x8xbf16>
        %188 = vector.shape_cast %187 : vector<1x8x8xbf16> to vector<8x8xbf16>
        %189 = vector.extract_strided_slice %186 {offsets = [0, 1, 0], sizes = [1, 8, 8], strides = [1, 1, 1]} : vector<1x11x32xbf16> to vector<1x8x8xbf16>
        %190 = vector.shape_cast %189 : vector<1x8x8xbf16> to vector<8x8xbf16>
        %191 = vector.extract_strided_slice %186 {offsets = [0, 2, 0], sizes = [1, 8, 8], strides = [1, 1, 1]} : vector<1x11x32xbf16> to vector<1x8x8xbf16>
        %192 = vector.shape_cast %191 : vector<1x8x8xbf16> to vector<8x8xbf16>
        %193 = vector.extract_strided_slice %186 {offsets = [0, 3, 0], sizes = [1, 8, 8], strides = [1, 1, 1]} : vector<1x11x32xbf16> to vector<1x8x8xbf16>
        %194 = vector.shape_cast %193 : vector<1x8x8xbf16> to vector<8x8xbf16>
        %195 = tpu.concatenate %188, %190, %192, %194 in 1 : vector<8x8xbf16>, vector<8x8xbf16>, vector<8x8xbf16>, vector<8x8xbf16> -> vector<8x32xbf16>
        %c0_78 = arith.constant 0 : index
        %c0_79 = arith.constant 0 : index
        %c0_80 = arith.constant 0 : index
        %196 = vector.load %alloca[%c0_78, %c0_79, %c0_80] : memref<4x32x8xbf16, #tpu.memory_space<vmem>>, vector<1x32x8xbf16>
        %197 = vector.shape_cast %196 : vector<1x32x8xbf16> to vector<32x8xbf16>
        %cst_81 = arith.constant dense<0.000000e+00> : vector<8x8xf32>
        %198 = tpu.matmul %195, %197, %cst_81 {dimension_numbers = #tpu.dot_dimension_numbers<[1], [0], [0], [1], [0, 0, 1, 1], [], []>} : vector<8x32xbf16>, vector<32x8xbf16>, vector<8x8xf32> -> vector<8x8xf32>
        %199 = vector.extract_strided_slice %186 {offsets = [0, 0, 8], sizes = [1, 8, 8], strides = [1, 1, 1]} : vector<1x11x32xbf16> to vector<1x8x8xbf16>
        %200 = vector.shape_cast %199 : vector<1x8x8xbf16> to vector<8x8xbf16>
        %201 = vector.extract_strided_slice %186 {offsets = [0, 1, 8], sizes = [1, 8, 8], strides = [1, 1, 1]} : vector<1x11x32xbf16> to vector<1x8x8xbf16>
        %202 = vector.shape_cast %201 : vector<1x8x8xbf16> to vector<8x8xbf16>
        %203 = vector.extract_strided_slice %186 {offsets = [0, 2, 8], sizes = [1, 8, 8], strides = [1, 1, 1]} : vector<1x11x32xbf16> to vector<1x8x8xbf16>
        %204 = vector.shape_cast %203 : vector<1x8x8xbf16> to vector<8x8xbf16>
        %205 = vector.extract_strided_slice %186 {offsets = [0, 3, 8], sizes = [1, 8, 8], strides = [1, 1, 1]} : vector<1x11x32xbf16> to vector<1x8x8xbf16>
        %206 = vector.shape_cast %205 : vector<1x8x8xbf16> to vector<8x8xbf16>
        %207 = tpu.concatenate %200, %202, %204, %206 in 1 : vector<8x8xbf16>, vector<8x8xbf16>, vector<8x8xbf16>, vector<8x8xbf16> -> vector<8x32xbf16>
        %c1 = arith.constant 1 : index
        %c0_82 = arith.constant 0 : index
        %c0_83 = arith.constant 0 : index
        %208 = vector.load %alloca[%c1, %c0_82, %c0_83] : memref<4x32x8xbf16, #tpu.memory_space<vmem>>, vector<1x32x8xbf16>
        %209 = vector.shape_cast %208 : vector<1x32x8xbf16> to vector<32x8xbf16>
        %cst_84 = arith.constant dense<0.000000e+00> : vector<8x8xf32>
        %210 = tpu.matmul %207, %209, %cst_84 {dimension_numbers = #tpu.dot_dimension_numbers<[1], [0], [0], [1], [0, 0, 1, 1], [], []>} : vector<8x32xbf16>, vector<32x8xbf16>, vector<8x8xf32> -> vector<8x8xf32>
        %211 = vector.extract_strided_slice %186 {offsets = [0, 0, 16], sizes = [1, 8, 8], strides = [1, 1, 1]} : vector<1x11x32xbf16> to vector<1x8x8xbf16>
        %212 = vector.shape_cast %211 : vector<1x8x8xbf16> to vector<8x8xbf16>
        %213 = vector.extract_strided_slice %186 {offsets = [0, 1, 16], sizes = [1, 8, 8], strides = [1, 1, 1]} : vector<1x11x32xbf16> to vector<1x8x8xbf16>
        %214 = vector.shape_cast %213 : vector<1x8x8xbf16> to vector<8x8xbf16>
        %215 = vector.extract_strided_slice %186 {offsets = [0, 2, 16], sizes = [1, 8, 8], strides = [1, 1, 1]} : vector<1x11x32xbf16> to vector<1x8x8xbf16>
        %216 = vector.shape_cast %215 : vector<1x8x8xbf16> to vector<8x8xbf16>
        %217 = vector.extract_strided_slice %186 {offsets = [0, 3, 16], sizes = [1, 8, 8], strides = [1, 1, 1]} : vector<1x11x32xbf16> to vector<1x8x8xbf16>
        %218 = vector.shape_cast %217 : vector<1x8x8xbf16> to vector<8x8xbf16>
        %219 = tpu.concatenate %212, %214, %216, %218 in 1 : vector<8x8xbf16>, vector<8x8xbf16>, vector<8x8xbf16>, vector<8x8xbf16> -> vector<8x32xbf16>
        %c2 = arith.constant 2 : index
        %c0_85 = arith.constant 0 : index
        %c0_86 = arith.constant 0 : index
        %220 = vector.load %alloca[%c2, %c0_85, %c0_86] : memref<4x32x8xbf16, #tpu.memory_space<vmem>>, vector<1x32x8xbf16>
        %221 = vector.shape_cast %220 : vector<1x32x8xbf16> to vector<32x8xbf16>
        %cst_87 = arith.constant dense<0.000000e+00> : vector<8x8xf32>
        %222 = tpu.matmul %219, %221, %cst_87 {dimension_numbers = #tpu.dot_dimension_numbers<[1], [0], [0], [1], [0, 0, 1, 1], [], []>} : vector<8x32xbf16>, vector<32x8xbf16>, vector<8x8xf32> -> vector<8x8xf32>
        %223 = vector.extract_strided_slice %186 {offsets = [0, 0, 24], sizes = [1, 8, 8], strides = [1, 1, 1]} : vector<1x11x32xbf16> to vector<1x8x8xbf16>
        %224 = vector.shape_cast %223 : vector<1x8x8xbf16> to vector<8x8xbf16>
        %225 = vector.extract_strided_slice %186 {offsets = [0, 1, 24], sizes = [1, 8, 8], strides = [1, 1, 1]} : vector<1x11x32xbf16> to vector<1x8x8xbf16>
        %226 = vector.shape_cast %225 : vector<1x8x8xbf16> to vector<8x8xbf16>
        %227 = vector.extract_strided_slice %186 {offsets = [0, 2, 24], sizes = [1, 8, 8], strides = [1, 1, 1]} : vector<1x11x32xbf16> to vector<1x8x8xbf16>
        %228 = vector.shape_cast %227 : vector<1x8x8xbf16> to vector<8x8xbf16>
        %229 = vector.extract_strided_slice %186 {offsets = [0, 3, 24], sizes = [1, 8, 8], strides = [1, 1, 1]} : vector<1x11x32xbf16> to vector<1x8x8xbf16>
        %230 = vector.shape_cast %229 : vector<1x8x8xbf16> to vector<8x8xbf16>
        %231 = tpu.concatenate %224, %226, %228, %230 in 1 : vector<8x8xbf16>, vector<8x8xbf16>, vector<8x8xbf16>, vector<8x8xbf16> -> vector<8x32xbf16>
        %c3 = arith.constant 3 : index
        %c0_88 = arith.constant 0 : index
        %c0_89 = arith.constant 0 : index
        %232 = vector.load %alloca[%c3, %c0_88, %c0_89] : memref<4x32x8xbf16, #tpu.memory_space<vmem>>, vector<1x32x8xbf16>
        %233 = vector.shape_cast %232 : vector<1x32x8xbf16> to vector<32x8xbf16>
        %cst_90 = arith.constant dense<0.000000e+00> : vector<8x8xf32>
        %234 = tpu.matmul %231, %233, %cst_90 {dimension_numbers = #tpu.dot_dimension_numbers<[1], [0], [0], [1], [0, 0, 1, 1], [], []>} : vector<8x32xbf16>, vector<32x8xbf16>, vector<8x8xf32> -> vector<8x8xf32>
        %235 = tpu.concatenate %198, %210, %222, %234 in 1 : vector<8x8xf32>, vector<8x8xf32>, vector<8x8xf32>, vector<8x8xf32> -> vector<8x32xf32>
        %c0_91 = arith.constant 0 : index
        %c0_92 = arith.constant 0 : index
        %236 = vector.load %arg4[%c0_91, %c0_92] : memref<1x32xf32, #tpu.memory_space<vmem>>, vector<1x32xf32>
        %237 = vector.broadcast %236 : vector<1x32xf32> to vector<8x32xf32>
        %238 = arith.addf %235, %237 : vector<8x32xf32>
        %cst_93 = arith.constant 5.000000e-01 : f32
        %239 = vector.broadcast %cst_93 : f32 to vector<8x32xf32>
        %240 = arith.mulf %239, %238 : vector<8x32xf32>
        %cst_94 = arith.constant 4.471500e-02 : f32
        %241 = vector.broadcast %cst_94 : f32 to vector<8x32xf32>
        %242 = arith.mulf %241, %238 : vector<8x32xf32>
        %243 = arith.mulf %242, %238 : vector<8x32xf32>
        %244 = arith.mulf %243, %238 : vector<8x32xf32>
        %245 = arith.addf %238, %244 : vector<8x32xf32>
        %cst_95 = arith.constant 0.797884583 : f32
        %246 = vector.broadcast %cst_95 : f32 to vector<8x32xf32>
        %247 = arith.mulf %246, %245 : vector<8x32xf32>
        %248 = math.tanh %247 : vector<8x32xf32>
        %cst_96 = arith.constant 1.000000e+00 : f32
        %249 = vector.broadcast %cst_96 : f32 to vector<8x32xf32>
        %250 = arith.addf %249, %248 : vector<8x32xf32>
        %251 = arith.mulf %240, %250 : vector<8x32xf32>
        %252 = arith.addf %185, %251 : vector<8x32xf32>
        %c0_97 = arith.constant 0 : index
        %c0_98 = arith.constant 0 : index
        %253 = vector.load %arg5[%c0_97, %c0_98] : memref<1x32xf32, #tpu.memory_space<vmem>>, vector<1x32xf32>
        %c0_99 = arith.constant 0 : index
        %c0_100 = arith.constant 0 : index
        %254 = vector.load %arg6[%c0_99, %c0_100] : memref<1x32xf32, #tpu.memory_space<vmem>>, vector<1x32xf32>
        %cst_101 = arith.constant dense<0.000000e+00> : vector<8xf32>
        %255 = vector.multi_reduction <add>, %252, %cst_101 [1] : vector<8x32xf32> to vector<8xf32>
        %256 = vector.shape_cast %255 : vector<8xf32> to vector<8x1xf32>
        %cst_102 = arith.constant 3.200000e+01 : f32
        %257 = vector.broadcast %cst_102 : f32 to vector<8x1xf32>
        %258 = arith.divf %256, %257 : vector<8x1xf32>
        %259 = vector.broadcast %258 : vector<8x1xf32> to vector<8x32xf32>
        %260 = arith.subf %252, %259 : vector<8x32xf32>
        %261 = arith.mulf %260, %260 : vector<8x32xf32>
        %cst_103 = arith.constant dense<0.000000e+00> : vector<8xf32>
        %262 = vector.multi_reduction <add>, %261, %cst_103 [1] : vector<8x32xf32> to vector<8xf32>
        %263 = vector.shape_cast %262 : vector<8xf32> to vector<8x1xf32>
        %cst_104 = arith.constant 3.200000e+01 : f32
        %264 = vector.broadcast %cst_104 : f32 to vector<8x1xf32>
        %265 = arith.divf %263, %264 : vector<8x1xf32>
        %cst_105 = arith.constant 9.99999974E-6 : f32
        %266 = vector.broadcast %cst_105 : f32 to vector<8x1xf32>
        %267 = arith.addf %265, %266 : vector<8x1xf32>
        %268 = math.rsqrt %267 : vector<8x1xf32>
        %269 = vector.broadcast %268 : vector<8x1xf32> to vector<8x32xf32>
        %270 = arith.mulf %260, %269 : vector<8x32xf32>
        %271 = vector.broadcast %253 : vector<1x32xf32> to vector<8x32xf32>
        %272 = arith.mulf %270, %271 : vector<8x32xf32>
        %273 = vector.broadcast %254 : vector<1x32xf32> to vector<8x32xf32>
        %274 = arith.addf %272, %273 : vector<8x32xf32>
        %c0_106 = arith.constant 0 : index
        %c0_107 = arith.constant 0 : index
        %275 = vector.load %arg20[%c0_106, %c0_107] : memref<8x32xf32, #tpu.memory_space<vmem>>, vector<8x32xf32>
        tpu.vector_store %arg20[%c0_106, %c0_107], %274 {strides = array<i32>} : memref<8x32xf32, #tpu.memory_space<vmem>>, vector<8x32xf32>,
        tpu.yield
      }) : () -> ()
    } else {
    }
    %c0 = arith.constant 0 : index
    %c0_1 = arith.constant 0 : index
    %3 = vector.load %arg20[%c0, %c0_1] : memref<8x32xf32, #tpu.memory_space<vmem>>, vector<8x32xf32>
    %4 = arith.truncf %3 : vector<8x32xf32> to vector<8x32xbf16>
    %c0_2 = arith.constant 0 : index
    %c0_3 = arith.constant 0 : index
    %c0_4 = arith.constant 0 : index
    %5 = vector.load %arg7[%c0_2, %c0_3, %c0_4] : memref<1x32x96xbf16, #tpu.memory_space<vmem>>, vector<1x32x96xbf16>
    %6 = vector.shape_cast %5 : vector<1x32x96xbf16> to vector<32x96xbf16>
    %cst = arith.constant dense<0.000000e+00> : vector<8x96xf32>
    %7 = tpu.matmul %4, %6, %cst {dimension_numbers = #tpu.dot_dimension_numbers<[1], [0], [0], [1], [0, 0, 1, 1], [], []>} : vector<8x32xbf16>, vector<32x96xbf16>, vector<8x96xf32> -> vector<8x96xf32>
    %c0_5 = arith.constant 0 : index
    %c0_6 = arith.constant 0 : index
    %c0_7 = arith.constant 0 : index
    %8 = vector.load %arg8[%c0_5, %c0_6, %c0_7] : memref<1x1x96xf32, #tpu.memory_space<vmem>>, vector<1x1x96xf32>
    %9 = vector.shape_cast %8 : vector<1x1x96xf32> to vector<1x96xf32>
    %10 = vector.broadcast %9 : vector<1x96xf32> to vector<8x96xf32>
    %11 = arith.addf %7, %10 : vector<8x96xf32>
    %12 = vector.extract_strided_slice %11 {offsets = [0, 0], sizes = [8, 32], strides = [1, 1]} : vector<8x96xf32> to vector<8x32xf32>
    %cst_8 = arith.constant 0.353553385 : f32
    %13 = vector.broadcast %cst_8 : f32 to vector<8x32xf32>
    %14 = arith.mulf %12, %13 : vector<8x32xf32>
    %15 = vector.shape_cast %14 : vector<8x32xf32> to vector<1x8x32xf32>
    %16 = arith.truncf %15 : vector<1x8x32xf32> to vector<1x8x32xbf16>
    %17 = vector.extract_strided_slice %11 {offsets = [0, 32], sizes = [8, 32], strides = [1, 1]} : vector<8x96xf32> to vector<8x32xf32>
    %18 = vector.shape_cast %17 : vector<8x32xf32> to vector<1x8x32xf32>
    %19 = arith.truncf %18 : vector<1x8x32xf32> to vector<1x8x32xbf16>
    %20 = vector.extract_strided_slice %11 {offsets = [0, 64], sizes = [8, 32], strides = [1, 1]} : vector<8x96xf32> to vector<8x32xf32>
    %21 = vector.shape_cast %20 : vector<8x32xf32> to vector<1x8x32xf32>
    %22 = arith.truncf %21 : vector<1x8x32xf32> to vector<1x8x32xbf16>
    %23 = vector.extract_strided_slice %16 {offsets = [0, 0, 0], sizes = [1, 8, 8], strides = [1, 1, 1]} : vector<1x8x32xbf16> to vector<1x8x8xbf16>
    %24 = vector.extract_strided_slice %19 {offsets = [0, 0, 0], sizes = [1, 8, 8], strides = [1, 1, 1]} : vector<1x8x32xbf16> to vector<1x8x8xbf16>
    "tpu.trace_start"() <{level = 10 : i32, message = "bqd,bkd->bqk"}> : () -> ()
    %cst_9 = arith.constant dense<0.000000e+00> : vector<1x8x8xf32>
    %25 = tpu.matmul %23, %24, %cst_9 {dimension_numbers = #tpu.dot_dimension_numbers<[2], [2], [1], [1], [0, 0, 0, 1, 1, 1], [0], [0]>} : vector<1x8x8xbf16>, vector<1x8x8xbf16>, vector<1x8x8xf32> -> vector<1x8x8xf32>
    "tpu.trace_stop"() : () -> ()
    %cst_10 = arith.constant dense<0xFF800000> : vector<1x8xf32>
    %26 = vector.multi_reduction <maximumf>, %25, %cst_10 [2] : vector<1x8x8xf32> to vector<1x8xf32>
    %27 = vector.shape_cast %26 : vector<1x8xf32> to vector<1x8x1xf32>
    %28 = vector.broadcast %27 : vector<1x8x1xf32> to vector<1x8x8xf32>
    %29 = arith.subf %25, %28 : vector<1x8x8xf32>
    %30 = math.exp %29 : vector<1x8x8xf32>
    %cst_11 = arith.constant dense<0.000000e+00> : vector<1x8xf32>
    %31 = vector.multi_reduction <add>, %30, %cst_11 [2] : vector<1x8x8xf32> to vector<1x8xf32>
    %32 = vector.shape_cast %31 : vector<1x8xf32> to vector<1x8x1xf32>
    %33 = tpu.reciprocal %32 {approx = true} : vector<1x8x1xf32> -> vector<1x8x1xf32>
    %34 = vector.broadcast %33 : vector<1x8x1xf32> to vector<1x8x8xf32>
    %35 = arith.mulf %30, %34 : vector<1x8x8xf32>
    %36 = arith.truncf %35 : vector<1x8x8xf32> to vector<1x8x8xbf16>
    %37 = vector.extract_strided_slice %22 {offsets = [0, 0, 0], sizes = [1, 8, 8], strides = [1, 1, 1]} : vector<1x8x32xbf16> to vector<1x8x8xbf16>
    "tpu.trace_start"() <{level = 10 : i32, message = "bqk,bkd->bqd"}> : () -> ()
    %cst_12 = arith.constant dense<0.000000e+00> : vector<1x8x8xf32>
    %38 = tpu.matmul %36, %37, %cst_12 {dimension_numbers = #tpu.dot_dimension_numbers<[2], [1], [1], [2], [0, 0, 0, 1, 1, 2], [0], [0]>} : vector<1x8x8xbf16>, vector<1x8x8xbf16>, vector<1x8x8xf32> -> vector<1x8x8xf32>
    "tpu.trace_stop"() : () -> ()
    %39 = arith.truncf %38 : vector<1x8x8xf32> to vector<1x8x8xbf16>
    %40 = vector.extract_strided_slice %16 {offsets = [0, 0, 8], sizes = [1, 8, 8], strides = [1, 1, 1]} : vector<1x8x32xbf16> to vector<1x8x8xbf16>
    %41 = vector.extract_strided_slice %19 {offsets = [0, 0, 8], sizes = [1, 8, 8], strides = [1, 1, 1]} : vector<1x8x32xbf16> to vector<1x8x8xbf16>
    "tpu.trace_start"() <{level = 10 : i32, message = "bqd,bkd->bqk"}> : () -> ()
    %cst_13 = arith.constant dense<0.000000e+00> : vector<1x8x8xf32>
    %42 = tpu.matmul %40, %41, %cst_13 {dimension_numbers = #tpu.dot_dimension_numbers<[2], [2], [1], [1], [0, 0, 0, 1, 1, 1], [0], [0]>} : vector<1x8x8xbf16>, vector<1x8x8xbf16>, vector<1x8x8xf32> -> vector<1x8x8xf32>
    "tpu.trace_stop"() : () -> ()
    %cst_14 = arith.constant dense<0xFF800000> : vector<1x8xf32>
    %43 = vector.multi_reduction <maximumf>, %42, %cst_14 [2] : vector<1x8x8xf32> to vector<1x8xf32>
    %44 = vector.shape_cast %43 : vector<1x8xf32> to vector<1x8x1xf32>
    %45 = vector.broadcast %44 : vector<1x8x1xf32> to vector<1x8x8xf32>
    %46 = arith.subf %42, %45 : vector<1x8x8xf32>
    %47 = math.exp %46 : vector<1x8x8xf32>
    %cst_15 = arith.constant dense<0.000000e+00> : vector<1x8xf32>
    %48 = vector.multi_reduction <add>, %47, %cst_15 [2] : vector<1x8x8xf32> to vector<1x8xf32>
    %49 = vector.shape_cast %48 : vector<1x8xf32> to vector<1x8x1xf32>
    %50 = tpu.reciprocal %49 {approx = true} : vector<1x8x1xf32> -> vector<1x8x1xf32>
    %51 = vector.broadcast %50 : vector<1x8x1xf32> to vector<1x8x8xf32>
    %52 = arith.mulf %47, %51 : vector<1x8x8xf32>
    %53 = arith.truncf %52 : vector<1x8x8xf32> to vector<1x8x8xbf16>
    %54 = vector.extract_strided_slice %22 {offsets = [0, 0, 8], sizes = [1, 8, 8], strides = [1, 1, 1]} : vector<1x8x32xbf16> to vector<1x8x8xbf16>
    "tpu.trace_start"() <{level = 10 : i32, message = "bqk,bkd->bqd"}> : () -> ()
    %cst_16 = arith.constant dense<0.000000e+00> : vector<1x8x8xf32>
    %55 = tpu.matmul %53, %54, %cst_16 {dimension_numbers = #tpu.dot_dimension_numbers<[2], [1], [1], [2], [0, 0, 0, 1, 1, 2], [0], [0]>} : vector<1x8x8xbf16>, vector<1x8x8xbf16>, vector<1x8x8xf32> -> vector<1x8x8xf32>
    "tpu.trace_stop"() : () -> ()
    %56 = arith.truncf %55 : vector<1x8x8xf32> to vector<1x8x8xbf16>
    %57 = vector.extract_strided_slice %16 {offsets = [0, 0, 16], sizes = [1, 8, 8], strides = [1, 1, 1]} : vector<1x8x32xbf16> to vector<1x8x8xbf16>
    %58 = vector.extract_strided_slice %19 {offsets = [0, 0, 16], sizes = [1, 8, 8], strides = [1, 1, 1]} : vector<1x8x32xbf16> to vector<1x8x8xbf16>
    "tpu.trace_start"() <{level = 10 : i32, message = "bqd,bkd->bqk"}> : () -> ()
    %cst_17 = arith.constant dense<0.000000e+00> : vector<1x8x8xf32>
    %59 = tpu.matmul %57, %58, %cst_17 {dimension_numbers = #tpu.dot_dimension_numbers<[2], [2], [1], [1], [0, 0, 0, 1, 1, 1], [0], [0]>} : vector<1x8x8xbf16>, vector<1x8x8xbf16>, vector<1x8x8xf32> -> vector<1x8x8xf32>
    "tpu.trace_stop"() : () -> ()
    %cst_18 = arith.constant dense<0xFF800000> : vector<1x8xf32>
    %60 = vector.multi_reduction <maximumf>, %59, %cst_18 [2] : vector<1x8x8xf32> to vector<1x8xf32>
    %61 = vector.shape_cast %60 : vector<1x8xf32> to vector<1x8x1xf32>
    %62 = vector.broadcast %61 : vector<1x8x1xf32> to vector<1x8x8xf32>
    %63 = arith.subf %59, %62 : vector<1x8x8xf32>
    %64 = math.exp %63 : vector<1x8x8xf32>
    %cst_19 = arith.constant dense<0.000000e+00> : vector<1x8xf32>
    %65 = vector.multi_reduction <add>, %64, %cst_19 [2] : vector<1x8x8xf32> to vector<1x8xf32>
    %66 = vector.shape_cast %65 : vector<1x8xf32> to vector<1x8x1xf32>
    %67 = tpu.reciprocal %66 {approx = true} : vector<1x8x1xf32> -> vector<1x8x1xf32>
    %68 = vector.broadcast %67 : vector<1x8x1xf32> to vector<1x8x8xf32>
    %69 = arith.mulf %64, %68 : vector<1x8x8xf32>
    %70 = arith.truncf %69 : vector<1x8x8xf32> to vector<1x8x8xbf16>
    %71 = vector.extract_strided_slice %22 {offsets = [0, 0, 16], sizes = [1, 8, 8], strides = [1, 1, 1]} : vector<1x8x32xbf16> to vector<1x8x8xbf16>
    "tpu.trace_start"() <{level = 10 : i32, message = "bqk,bkd->bqd"}> : () -> ()
    %cst_20 = arith.constant dense<0.000000e+00> : vector<1x8x8xf32>
    %72 = tpu.matmul %70, %71, %cst_20 {dimension_numbers = #tpu.dot_dimension_numbers<[2], [1], [1], [2], [0, 0, 0, 1, 1, 2], [0], [0]>} : vector<1x8x8xbf16>, vector<1x8x8xbf16>, vector<1x8x8xf32> -> vector<1x8x8xf32>
    "tpu.trace_stop"() : () -> ()
    %73 = arith.truncf %72 : vector<1x8x8xf32> to vector<1x8x8xbf16>
    %74 = vector.extract_strided_slice %16 {offsets = [0, 0, 24], sizes = [1, 8, 8], strides = [1, 1, 1]} : vector<1x8x32xbf16> to vector<1x8x8xbf16>
    %75 = vector.extract_strided_slice %19 {offsets = [0, 0, 24], sizes = [1, 8, 8], strides = [1, 1, 1]} : vector<1x8x32xbf16> to vector<1x8x8xbf16>
    "tpu.trace_start"() <{level = 10 : i32, message = "bqd,bkd->bqk"}> : () -> ()
    %cst_21 = arith.constant dense<0.000000e+00> : vector<1x8x8xf32>
    %76 = tpu.matmul %74, %75, %cst_21 {dimension_numbers = #tpu.dot_dimension_numbers<[2], [2], [1], [1], [0, 0, 0, 1, 1, 1], [0], [0]>} : vector<1x8x8xbf16>, vector<1x8x8xbf16>, vector<1x8x8xf32> -> vector<1x8x8xf32>
    "tpu.trace_stop"() : () -> ()
    %cst_22 = arith.constant dense<0xFF800000> : vector<1x8xf32>
    %77 = vector.multi_reduction <maximumf>, %76, %cst_22 [2] : vector<1x8x8xf32> to vector<1x8xf32>
    %78 = vector.shape_cast %77 : vector<1x8xf32> to vector<1x8x1xf32>
    %79 = vector.broadcast %78 : vector<1x8x1xf32> to vector<1x8x8xf32>
    %80 = arith.subf %76, %79 : vector<1x8x8xf32>
    %81 = math.exp %80 : vector<1x8x8xf32>
    %cst_23 = arith.constant dense<0.000000e+00> : vector<1x8xf32>
    %82 = vector.multi_reduction <add>, %81, %cst_23 [2] : vector<1x8x8xf32> to vector<1x8xf32>
    %83 = vector.shape_cast %82 : vector<1x8xf32> to vector<1x8x1xf32>
    %84 = tpu.reciprocal %83 {approx = true} : vector<1x8x1xf32> -> vector<1x8x1xf32>
    %85 = vector.broadcast %84 : vector<1x8x1xf32> to vector<1x8x8xf32>
    %86 = arith.mulf %81, %85 : vector<1x8x8xf32>
    %87 = arith.truncf %86 : vector<1x8x8xf32> to vector<1x8x8xbf16>
    %88 = vector.extract_strided_slice %22 {offsets = [0, 0, 24], sizes = [1, 8, 8], strides = [1, 1, 1]} : vector<1x8x32xbf16> to vector<1x8x8xbf16>
    "tpu.trace_start"() <{level = 10 : i32, message = "bqk,bkd->bqd"}> : () -> ()
    %cst_24 = arith.constant dense<0.000000e+00> : vector<1x8x8xf32>
    %89 = tpu.matmul %87, %88, %cst_24 {dimension_numbers = #tpu.dot_dimension_numbers<[2], [1], [1], [2], [0, 0, 0, 1, 1, 2], [0], [0]>} : vector<1x8x8xbf16>, vector<1x8x8xbf16>, vector<1x8x8xf32> -> vector<1x8x8xf32>
    "tpu.trace_stop"() : () -> ()
    %90 = arith.truncf %89 : vector<1x8x8xf32> to vector<1x8x8xbf16>
    %91 = tpu.concatenate %39, %56, %73, %90 in 2 : vector<1x8x8xbf16>, vector<1x8x8xbf16>, vector<1x8x8xbf16>, vector<1x8x8xbf16> -> vector<1x8x32xbf16>
    %92 = vector.shape_cast %91 : vector<1x8x32xbf16> to vector<8x32xbf16>
    %c0_25 = arith.constant 0 : index
    %c0_26 = arith.constant 0 : index
    %c0_27 = arith.constant 0 : index
    %93 = vector.load %arg9[%c0_25, %c0_26, %c0_27] : memref<1x32x32xbf16, #tpu.memory_space<vmem>>, vector<1x32x32xbf16>
    %94 = vector.shape_cast %93 : vector<1x32x32xbf16> to vector<32x32xbf16>
    %cst_28 = arith.constant dense<0.000000e+00> : vector<8x32xf32>
    %95 = tpu.matmul %92, %94, %cst_28 {dimension_numbers = #tpu.dot_dimension_numbers<[1], [0], [0], [1], [0, 0, 1, 1], [], []>} : vector<8x32xbf16>, vector<32x32xbf16>, vector<8x32xf32> -> vector<8x32xf32>
    %c0_29 = arith.constant 0 : index
    %c0_30 = arith.constant 0 : index
    %c0_31 = arith.constant 0 : index
    %96 = vector.load %arg10[%c0_29, %c0_30, %c0_31] : memref<1x1x32xf32, #tpu.memory_space<vmem>>, vector<1x1x32xf32>
    %97 = vector.shape_cast %96 : vector<1x1x32xf32> to vector<1x32xf32>
    %98 = vector.broadcast %97 : vector<1x32xf32> to vector<8x32xf32>
    %99 = arith.addf %95, %98 : vector<8x32xf32>
    %100 = arith.addf %3, %99 : vector<8x32xf32>
    %c0_32 = arith.constant 0 : index
    %c0_33 = arith.constant 0 : index
    %c0_34 = arith.constant 0 : index
    %101 = vector.load %arg11[%c0_32, %c0_33, %c0_34] : memref<1x1x32xf32, #tpu.memory_space<vmem>>, vector<1x1x32xf32>
    %102 = vector.shape_cast %101 : vector<1x1x32xf32> to vector<1x32xf32>
    %c0_35 = arith.constant 0 : index
    %c0_36 = arith.constant 0 : index
    %c0_37 = arith.constant 0 : index
    %103 = vector.load %arg12[%c0_35, %c0_36, %c0_37] : memref<1x1x32xf32, #tpu.memory_space<vmem>>, vector<1x1x32xf32>
    %104 = vector.shape_cast %103 : vector<1x1x32xf32> to vector<1x32xf32>
    %cst_38 = arith.constant dense<0.000000e+00> : vector<8xf32>
    %105 = vector.multi_reduction <add>, %100, %cst_38 [1] : vector<8x32xf32> to vector<8xf32>
    %106 = vector.shape_cast %105 : vector<8xf32> to vector<8x1xf32>
    %cst_39 = arith.constant 3.200000e+01 : f32
    %107 = vector.broadcast %cst_39 : f32 to vector<8x1xf32>
    %108 = arith.divf %106, %107 : vector<8x1xf32>
    %109 = vector.broadcast %108 : vector<8x1xf32> to vector<8x32xf32>
    %110 = arith.subf %100, %109 : vector<8x32xf32>
    %111 = arith.mulf %110, %110 : vector<8x32xf32>
    %cst_40 = arith.constant dense<0.000000e+00> : vector<8xf32>
    %112 = vector.multi_reduction <add>, %111, %cst_40 [1] : vector<8x32xf32> to vector<8xf32>
    %113 = vector.shape_cast %112 : vector<8xf32> to vector<8x1xf32>
    %cst_41 = arith.constant 3.200000e+01 : f32
    %114 = vector.broadcast %cst_41 : f32 to vector<8x1xf32>
    %115 = arith.divf %113, %114 : vector<8x1xf32>
    %cst_42 = arith.constant 9.99999974E-6 : f32
    %116 = vector.broadcast %cst_42 : f32 to vector<8x1xf32>
    %117 = arith.addf %115, %116 : vector<8x1xf32>
    %118 = math.rsqrt %117 : vector<8x1xf32>
    %119 = vector.broadcast %118 : vector<8x1xf32> to vector<8x32xf32>
    %120 = arith.mulf %110, %119 : vector<8x32xf32>
    %121 = vector.broadcast %102 : vector<1x32xf32> to vector<8x32xf32>
    %122 = arith.mulf %120, %121 : vector<8x32xf32>
    %123 = vector.broadcast %104 : vector<1x32xf32> to vector<8x32xf32>
    %124 = arith.addf %122, %123 : vector<8x32xf32>
    %125 = arith.truncf %124 : vector<8x32xf32> to vector<8x32xbf16>
    %c0_43 = arith.constant 0 : index
    %c0_44 = arith.constant 0 : index
    %c0_45 = arith.constant 0 : index
    %126 = vector.load %arg13[%c0_43, %c0_44, %c0_45] : memref<1x32x64xbf16, #tpu.memory_space<vmem>>, vector<1x32x64xbf16>
    %127 = vector.shape_cast %126 : vector<1x32x64xbf16> to vector<32x64xbf16>
    %cst_46 = arith.constant dense<0.000000e+00> : vector<8x64xf32>
    %128 = tpu.matmul %125, %127, %cst_46 {dimension_numbers = #tpu.dot_dimension_numbers<[1], [0], [0], [1], [0, 0, 1, 1], [], []>} : vector<8x32xbf16>, vector<32x64xbf16>, vector<8x64xf32> -> vector<8x64xf32>
    %c0_47 = arith.constant 0 : index
    %c0_48 = arith.constant 0 : index
    %c0_49 = arith.constant 0 : index
    %129 = vector.load %arg14[%c0_47, %c0_48, %c0_49] : memref<1x1x64xf32, #tpu.memory_space<vmem>>, vector<1x1x64xf32>
    %130 = vector.shape_cast %129 : vector<1x1x64xf32> to vector<1x64xf32>
    %131 = vector.broadcast %130 : vector<1x64xf32> to vector<8x64xf32>
    %132 = arith.addf %128, %131 : vector<8x64xf32>
    %cst_50 = arith.constant 5.000000e-01 : f32
    %133 = vector.broadcast %cst_50 : f32 to vector<8x64xf32>
    %134 = arith.mulf %133, %132 : vector<8x64xf32>
    %cst_51 = arith.constant 4.471500e-02 : f32
    %135 = vector.broadcast %cst_51 : f32 to vector<8x64xf32>
    %136 = arith.mulf %135, %132 : vector<8x64xf32>
    %137 = arith.mulf %136, %132 : vector<8x64xf32>
    %138 = arith.mulf %137, %132 : vector<8x64xf32>
    %139 = arith.addf %132, %138 : vector<8x64xf32>
    %cst_52 = arith.constant 0.797884583 : f32
    %140 = vector.broadcast %cst_52 : f32 to vector<8x64xf32>
    %141 = arith.mulf %140, %139 : vector<8x64xf32>
    %142 = math.tanh %141 : vector<8x64xf32>
    %cst_53 = arith.constant 1.000000e+00 : f32
    %143 = vector.broadcast %cst_53 : f32 to vector<8x64xf32>
    %144 = arith.addf %143, %142 : vector<8x64xf32>
    %145 = arith.mulf %134, %144 : vector<8x64xf32>
    %146 = arith.truncf %145 : vector<8x64xf32> to vector<8x64xbf16>
    %c0_54 = arith.constant 0 : index
    %c0_55 = arith.constant 0 : index
    %c0_56 = arith.constant 0 : index
    %147 = vector.load %arg15[%c0_54, %c0_55, %c0_56] : memref<1x64x32xbf16, #tpu.memory_space<vmem>>, vector<1x64x32xbf16>
    %148 = vector.shape_cast %147 : vector<1x64x32xbf16> to vector<64x32xbf16>
    %cst_57 = arith.constant dense<0.000000e+00> : vector<8x32xf32>
    %149 = tpu.matmul %146, %148, %cst_57 {dimension_numbers = #tpu.dot_dimension_numbers<[1], [0], [0], [1], [0, 0, 1, 1], [], []>} : vector<8x64xbf16>, vector<64x32xbf16>, vector<8x32xf32> -> vector<8x32xf32>
    %c0_58 = arith.constant 0 : index
    %c0_59 = arith.constant 0 : index
    %c0_60 = arith.constant 0 : index
    %150 = vector.load %arg16[%c0_58, %c0_59, %c0_60] : memref<1x1x32xf32, #tpu.memory_space<vmem>>, vector<1x1x32xf32>
    %151 = vector.shape_cast %150 : vector<1x1x32xf32> to vector<1x32xf32>
    %152 = vector.broadcast %151 : vector<1x32xf32> to vector<8x32xf32>
    %153 = arith.addf %149, %152 : vector<8x32xf32>
    %154 = arith.addf %124, %153 : vector<8x32xf32>
    %c0_61 = arith.constant 0 : index
    %c0_62 = arith.constant 0 : index
    %c0_63 = arith.constant 0 : index
    %155 = vector.load %arg17[%c0_61, %c0_62, %c0_63] : memref<1x1x32xf32, #tpu.memory_space<vmem>>, vector<1x1x32xf32>
    %156 = vector.shape_cast %155 : vector<1x1x32xf32> to vector<1x32xf32>
    %c0_64 = arith.constant 0 : index
    %c0_65 = arith.constant 0 : index
    %c0_66 = arith.constant 0 : index
    %157 = vector.load %arg18[%c0_64, %c0_65, %c0_66] : memref<1x1x32xf32, #tpu.memory_space<vmem>>, vector<1x1x32xf32>
    %158 = vector.shape_cast %157 : vector<1x1x32xf32> to vector<1x32xf32>
    %cst_67 = arith.constant dense<0.000000e+00> : vector<8xf32>
    %159 = vector.multi_reduction <add>, %154, %cst_67 [1] : vector<8x32xf32> to vector<8xf32>
    %160 = vector.shape_cast %159 : vector<8xf32> to vector<8x1xf32>
    %cst_68 = arith.constant 3.200000e+01 : f32
    %161 = vector.broadcast %cst_68 : f32 to vector<8x1xf32>
    %162 = arith.divf %160, %161 : vector<8x1xf32>
    %163 = vector.broadcast %162 : vector<8x1xf32> to vector<8x32xf32>
    %164 = arith.subf %154, %163 : vector<8x32xf32>
    %165 = arith.mulf %164, %164 : vector<8x32xf32>
    %cst_69 = arith.constant dense<0.000000e+00> : vector<8xf32>
    %166 = vector.multi_reduction <add>, %165, %cst_69 [1] : vector<8x32xf32> to vector<8xf32>
    %167 = vector.shape_cast %166 : vector<8xf32> to vector<8x1xf32>
    %cst_70 = arith.constant 3.200000e+01 : f32
    %168 = vector.broadcast %cst_70 : f32 to vector<8x1xf32>
    %169 = arith.divf %167, %168 : vector<8x1xf32>
    %cst_71 = arith.constant 9.99999974E-6 : f32
    %170 = vector.broadcast %cst_71 : f32 to vector<8x1xf32>
    %171 = arith.addf %169, %170 : vector<8x1xf32>
    %172 = math.rsqrt %171 : vector<8x1xf32>
    %173 = vector.broadcast %172 : vector<8x1xf32> to vector<8x32xf32>
    %174 = arith.mulf %164, %173 : vector<8x32xf32>
    %175 = vector.broadcast %156 : vector<1x32xf32> to vector<8x32xf32>
    %176 = arith.mulf %174, %175 : vector<8x32xf32>
    %177 = vector.broadcast %158 : vector<1x32xf32> to vector<8x32xf32>
    %178 = arith.addf %176, %177 : vector<8x32xf32>
    %c0_72 = arith.constant 0 : index
    %c0_73 = arith.constant 0 : index
    %179 = vector.load %arg20[%c0_72, %c0_73] : memref<8x32xf32, #tpu.memory_space<vmem>>, vector<8x32xf32>
    tpu.vector_store %arg20[%c0_72, %c0_73], %178 {strides = array<i32>} : memref<8x32xf32, #tpu.memory_space<vmem>>, vector<8x32xf32>,
    %c1_i32 = arith.constant 1 : i32
    %180 = arith.cmpi eq, %arg1, %c1_i32 : i32
    %181 = arith.extui %180 : i1 to i32
    %c0_i32_74 = arith.constant 0 : i32
    %182 = arith.cmpi ne, %181, %c0_i32_74 : i32
    scf.if %182 {
      %183 = vector.shape_cast %178 : vector<8x32xf32> to vector<1x8x32xf32>
      %c0_75 = arith.constant 0 : index
      %c0_76 = arith.constant 0 : index
      %c0_77 = arith.constant 0 : index
      %184 = vector.load %arg19[%c0_75, %c0_76, %c0_77] : memref<1x8x32xf32, #tpu.memory_space<vmem>>, vector<1x8x32xf32>
      tpu.vector_store %arg19[%c0_75, %c0_76, %c0_77], %183 {strides = array<i32>} : memref<1x8x32xf32, #tpu.memory_space<vmem>>, vector<1x8x32xf32>,
    } else {
    }
    return
  }
  func.func @transform_0(%arg0: i32, %arg1: i32) -> (i32, i32, i32) {
    %c0_i32 = arith.constant 0 : i32
    %c0_i32_0 = arith.constant 0 : i32
    %c0_i32_1 = arith.constant 0 : i32
    return %arg0, %c0_i32, %c0_i32_0 : i32, i32, i32
  }
  func.func @transform_2(%arg0: i32, %arg1: i32) -> (i32, i32) {
    %c0_i32 = arith.constant 0 : i32
    %c0_i32_0 = arith.constant 0 : i32
    %c0_i32_1 = arith.constant 0 : i32
    return %c0_i32, %c0_i32_0 : i32, i32
  }
  func.func @transform_3(%arg0: i32, %arg1: i32) -> (i32, i32) {
    %c0_i32 = arith.constant 0 : i32
    %c0_i32_0 = arith.constant 0 : i32
    %c0_i32_1 = arith.constant 0 : i32
    return %c0_i32, %c0_i32_0 : i32, i32
  }
  func.func @transform_4(%arg0: i32, %arg1: i32) -> (i32, i32) {
    %c0_i32 = arith.constant 0 : i32
    %c0_i32_0 = arith.constant 0 : i32
    %c0_i32_1 = arith.constant 0 : i32
    return %c0_i32, %c0_i32_0 : i32, i32
  }
  func.func @transform_5(%arg0: i32, %arg1: i32) -> (i32, i32, i32) {
    %c0_i32 = arith.constant 0 : i32
    %c0_i32_0 = arith.constant 0 : i32
    %c0_i32_1 = arith.constant 0 : i32
    return %arg1, %c0_i32, %c0_i32_0 : i32, i32, i32
  }
  func.func @transform_6(%arg0: i32, %arg1: i32) -> (i32, i32, i32) {
    %c0_i32 = arith.constant 0 : i32
    %c0_i32_0 = arith.constant 0 : i32
    %c0_i32_1 = arith.constant 0 : i32
    return %arg1, %c0_i32, %c0_i32_0 : i32, i32, i32
  }
  func.func @transform_7(%arg0: i32, %arg1: i32) -> (i32, i32, i32) {
    %c0_i32 = arith.constant 0 : i32
    %c0_i32_0 = arith.constant 0 : i32
    %c0_i32_1 = arith.constant 0 : i32
    return %arg1, %c0_i32, %c0_i32_0 : i32, i32, i32
  }
  func.func @transform_8(%arg0: i32, %arg1: i32) -> (i32, i32, i32) {
    %c0_i32 = arith.constant 0 : i32
    %c0_i32_0 = arith.constant 0 : i32
    %c0_i32_1 = arith.constant 0 : i32
    return %arg1, %c0_i32, %c0_i32_0 : i32, i32, i32
  }
  func.func @transform_9(%arg0: i32, %arg1: i32) -> (i32, i32, i32) {
    %c0_i32 = arith.constant 0 : i32
    %c0_i32_0 = arith.constant 0 : i32
    %c0_i32_1 = arith.constant 0 : i32
    return %arg1, %c0_i32, %c0_i32_0 : i32, i32, i32
  }
  func.func @transform_10(%arg0: i32, %arg1: i32) -> (i32, i32, i32) {
    %c0_i32 = arith.constant 0 : i32
    %c0_i32_0 = arith.constant 0 : i32
    %c0_i32_1 = arith.constant 0 : i32
    return %arg1, %c0_i32, %c0_i32_0 : i32, i32, i32
  }
  func.func @transform_11(%arg0: i32, %arg1: i32) -> (i32, i32, i32) {
    %c0_i32 = arith.constant 0 : i32
    %c0_i32_0 = arith.constant 0 : i32
    %c0_i32_1 = arith.constant 0 : i32
    return %arg1, %c0_i32, %c0_i32_0 : i32, i32, i32
  }
  func.func @transform_12(%arg0: i32, %arg1: i32) -> (i32, i32, i32) {
    %c0_i32 = arith.constant 0 : i32
    %c0_i32_0 = arith.constant 0 : i32
    %c0_i32_1 = arith.constant 0 : i32
    return %arg1, %c0_i32, %c0_i32_0 : i32, i32, i32
  }
  func.func @transform_13(%arg0: i32, %arg1: i32) -> (i32, i32, i32) {
    %c0_i32 = arith.constant 0 : i32
    %c0_i32_0 = arith.constant 0 : i32
    %c0_i32_1 = arith.constant 0 : i32
    return %arg1, %c0_i32, %c0_i32_0 : i32, i32, i32
  }
  func.func @transform_14(%arg0: i32, %arg1: i32) -> (i32, i32, i32) {
    %c0_i32 = arith.constant 0 : i32
    %c0_i32_0 = arith.constant 0 : i32
    %c0_i32_1 = arith.constant 0 : i32
    return %arg1, %c0_i32, %c0_i32_0 : i32, i32, i32
  }
  func.func @transform_15(%arg0: i32, %arg1: i32) -> (i32, i32, i32) {
    %c0_i32 = arith.constant 0 : i32
    %c0_i32_0 = arith.constant 0 : i32
    %c0_i32_1 = arith.constant 0 : i32
    return %arg1, %c0_i32, %c0_i32_0 : i32, i32, i32
  }
  func.func @transform_16(%arg0: i32, %arg1: i32) -> (i32, i32, i32) {
    %c0_i32 = arith.constant 0 : i32
    %c0_i32_0 = arith.constant 0 : i32
    %c0_i32_1 = arith.constant 0 : i32
    return %arg1, %c0_i32, %c0_i32_0 : i32, i32, i32
  }
  func.func @transform_17(%arg0: i32, %arg1: i32) -> (i32, i32, i32) {
    %c0_i32 = arith.constant 0 : i32
    %c0_i32_0 = arith.constant 0 : i32
    %c0_i32_1 = arith.constant 0 : i32
    return %arg0, %c0_i32, %c0_i32_0 : i32, i32, i32
  }
}

</mosaic_0001>

<bundles_post_ra>
// kernel: tpu_custom_call.1
= control target key start
LH: loop header
LB: loop body
LE: loop exit
PB: predicated region body
PF: predicated region fallthrough
CT: control target
= control target key end

     0   :  { %s2653_s0 = inlined_call_operand.vmem [shape: f32[2,11,32], index: 0, kind: input, shape index: {}]   ;;  %s2654_s1 = inlined_call_operand.vmem [shape: bf16[4,32,8], index: 1, kind: input, shape index: {}]   ;;  %s2655_s2 = inlined_call_operand.vmem [shape: f32[1,32], index: 2, kind: input, shape index: {}]   ;;  %s2656_s3 = inlined_call_operand.vmem [shape: f32[1,32], index: 3, kind: input, shape index: {}]   ;;  %s2657_s4 = inlined_call_operand.vmem [shape: f32[1,32], index: 4, kind: input, shape index: {}]   ;;  %s2658_s5 = inlined_call_operand.vmem [shape: bf16[2,32,96], index: 5, kind: input, shape index: {}]   ;;  %s2659_s6 = inlined_call_operand.vmem [shape: f32[2,1,96], index: 6, kind: input, shape index: {}]   ;;  %s2660_s7 = inlined_call_operand.vmem [shape: bf16[2,32,32], index: 7, kind: input, shape index: {}]   ;;  %s2661_s8 = inlined_call_operand.vmem [shape: f32[2,1,32], index: 8, kind: input, shape index: {}]   ;;  %s2662_s9 = inlined_call_operand.vmem [shape: f32[2,1,32], index: 9, kind: input, shape index: {}]   ;;  %s2663_s10 = inlined_call_operand.vmem [shape: f32[2,1,32], index: 10, kind: input, shape index: {}]   ;;  %s2664_s11 = inlined_call_operand.vmem [shape: bf16[2,32,64], index: 11, kind: input, shape index: {}]   ;;  %s2665_s12 = inlined_call_operand.vmem [shape: f32[2,1,64], index: 12, kind: input, shape index: {}]   ;;  %s2666_s13 = inlined_call_operand.vmem [shape: bf16[2,64,32], index: 13, kind: input, shape index: {}]   ;;  %s2667_s14 = inlined_call_operand.vmem [shape: f32[2,1,32], index: 14, kind: input, shape index: {}]   ;;  %s2668_s15 = inlined_call_operand.vmem [shape: f32[2,1,32], index: 15, kind: input, shape index: {}]   ;;  %s2669_s16 = inlined_call_operand.vmem [shape: f32[2,1,32], index: 16, kind: input, shape index: {}]   ;;  %s2670_s17 = inlined_call_operand.hbm [shape: f32[2,8,32], index: 17, kind: output, shape index: {}]  }
   0x1   :  { %2688 = sst [smem:[#allocation24_spill]] %s2653_s0 }
   0x2   :  { %2689 = sst [smem:[#allocation25_spill]] %s2654_s1 }
   0x3   :  { %2690 = sst [smem:[#allocation26_spill]] %s2655_s2 }
   0x4   :  { %2691 = sst [smem:[#allocation27_spill]] %s2656_s3 }
   0x5   :  { %2692 = sst [smem:[#allocation28_spill]] %s2657_s4 }
   0x6   :  { %2693 = sst [smem:[#allocation29_spill]] %s2658_s5 }
   0x7   :  { %2694 = sst [smem:[#allocation30_spill]] %s2660_s7 }
   0x8   :  { %2695 = sst [smem:[#allocation31_spill]] %s2670_s17 }
   0x9   :  { %22 = vsyncpa [#allocation4], 0 }
   0xa   :  { %24 = vsyncpa [#allocation4 + $0x1], 0  ;;  %s2275_s24 = smov 0   ;;  %s2277_s25 = smov 0  }
   0xb   :  { %s2279_s26 = smov 0   ;;  %s2281_s27 = smov 0  }
   0xc   :  { %s2283_s28 = smov 0   ;;  %s2285_s29 = smov 0  }
   0xd   :  { %s2287_s0 = smov 0   ;;  %s2289_s30 = smov 0  }
   0xe LB: > { %2696 = sst [smem:[#allocation10_spill]] %s2133_s24  ;;  %s1796_s18 = sadd.s32 4294967295, %s2161_s30   ;;  %s2161_s30 = sphi %s2289_s30, %s30_s30   ;;  %s2157_s0 = sphi %s2287_s0, %s2740_s0   ;;  %s2153_s29 = sphi %s2285_s29, %s2739_s29   ;;  %s2149_s28 = sphi %s2283_s28, %s2738_s28   ;;  %s2145_s27 = sphi %s2281_s27, %s2737_s27   ;;  %s2141_s26 = sphi %s2279_s26, %s2736_s26   ;;  %s2137_s25 = sphi %s2277_s25, %s2735_s25   ;;  %s2133_s24 = sphi %s2275_s24, %s2734_s24  }
   0xf   : > { %2697 = sst [smem:[#allocation11_spill]] %s2137_s25  ;;  %s1797_s19 = sadd.s32 4294967294, %s2161_s30  }
  0x10   : > { %2698 = sst [smem:[#allocation12_spill]] %s2141_s26  ;;  %s39_s1 = sadd.s32 1, %s2153_s29 }
  0x11   : > { %2699 = sst [smem:[#allocation13_spill]] %s2149_s28  ;;  %p40_p0 = scmp.ge.s32.totalorder %s39_s1, 2 }
  0x12   : > { %2700 = sst [smem:[#allocation14_spill]] %s2153_s29  ;;  %s42_s20 = sadd.s32 1, %s2157_s0 }
  0x13   : > { %2701 = sst [smem:[#allocation15_spill]] %s2157_s0  ;;  %p460_p1 = scmp.ne.s32.totalorder %s2141_s26, %s2137_s25 }
  0x14   : > { %2702 = sst [smem:[#allocation16_spill]] %s2161_s30  ;;  %p461_p2 = scmp.eq.s32.totalorder %s1796_s18, 3 }
  0x15   : > { %s2742_s1 = smov (%p40_p0, %s39_s1), 0  ;;  %s2744_s20 = smov (!%p40_p0, %s42_s20), %s2157_s0 }
  0x16   : > { %2703 = sst [smem:[#allocation17_spill]] %s2742_s1  ;;  %p2324_p3 = por %p461_p2, %p460_p1 }
  0x17   : > { %p466_p4 = scmp.ne.s32.totalorder %s2137_s25, %s2133_s24  ;;  %p44_p5 = scmp.ge.s32.totalorder %s2744_s20, 2 }
  0x18   : > { %s2704_s21 = scalar_select %p2324_p3, 1, 0 }
  0x19   : > { %p467_p6 = scmp.eq.s32.totalorder %s1797_s19, 3  ;;  %p1800_p7 = scmp.ge.s32.totalorder %s2161_s30, 1 }
  0x1a   : > { %2705 = sst [smem:[#allocation18_spill]] %s2704_s21  ;;  %p582_p8 = scmp.lt.s32.totalorder %s2161_s30, 5 }
  0x1b   : > { %s2746_s20 = smov (%p44_p5, %s2744_s20), 0  ;;  %p2334_p9 = por %p467_p6, %p466_p4 }
  0x1c   : > { %2706 = sst [smem:[#allocation19_spill]] %s2746_s20  ;;  %p583_p10 = pnand %p1800_p7, %p582_p8 }
  0x1d   : > { %s2707_s22 = scalar_select %p2334_p9, 1, 0 }
  0x1e   : > { %s447_s23 = ssub.s32 %s2157_s0, %s2746_s20  ;;  %s450_s18 = sadd.s32 1, %s2141_s26 }
  0x1f   : > { %2708 = sst [smem:[#allocation20_spill]] %s2707_s22  ;;  %p448_p11 = scmp.eq.s32.totalorder %s447_s23, 0 }
  0x20   : > { %586 = sbr.rel (%p583_p10) target bundleno = 2696 (0xa88), region = 84 }
  0x21   : > { %s2342_s1 = scalar_select %p448_p11, %s2141_s26, %s450_s18  }
  0x23   : > { %2709 = sst [smem:[#allocation21_spill]] %s2342_s1 }
  0x25   : > { %s2677_s19 = sand.u32 1, %s2137_s25   ;;  %p676_p12 = scmp.lt.s32.totalorder %s2149_s28, 1 }
  0x26   : > { %s2348_s29 = sshll.u32 %s2677_s19, 3  ;;  %p681_p13 = scmp.lt.s32.totalorder %s2145_s27, 1 }
  0x27   : > { %s677_s22 = scalar_select %p676_p12, %s2149_s28, 1 }
  0x28   : > { %s2353_s24 = scalar_select %p681_p13, %s2145_s27, 1 }
  0x29   : > { %s1906_s23 = sshll.u32 %s677_s22, 4  ;;  %s2710_s0 = sld [smem:[#allocation24_spill]] }
  0x2a   : > { %s1907_s1 = sshll.u32 %s2353_s24, 4  ;;  %s2712_s5 = sld [smem:[#allocation29_spill]] }
  0x2b   : > { %s2714_s7 = sld [smem:[#allocation30_spill]]  ;;  %s2390_s21 = scalar_lea.vmem %s2664_s11, %s1907_s1 }
  0x2c   : > { %s710_s28 = scalar_lea.vmem %s2665_s12, %s2353_s24  ;;  %s675_s3 = scalar_lea.vmem [#allocation3], %s2348_s29 }
  0x2d   : > { %p1812_p0 = scmp.ne.s32.totalorder %s2145_s27, 0 }
  0x2f   : > { %s2358_s19 = scalar_lea.vmem %s2710_s0, %s1906_s23  ;;  %729 = sbr.rel (%p1812_p0) target bundleno = 764 (0x2fc), region = 88 }
  0x30   : > { %2711 = sst [smem:[#allocation22_spill]] %s2358_s19  ;;  %s2364_s17 = scalar_lea.vmem %s2712_s5, %s1907_s1 }
  0x31   : > { %2713 = sst [smem:[#allocation23_spill]] %s2364_s17  ;;  %s2373_s22 = scalar_lea.vmem %s2714_s7, %s1907_s1 }
  0x32   : > { %s1910_s7 = sshll.u32 %s2353_s24, 5  ;;  %s721_s17 = scalar_lea.vmem %s2668_s15, %s2353_s24 }
  0x33   : > { %s2404_s19 = scalar_lea.vmem %s2666_s13, %s1910_s7  ;;  %s724_s5 = scalar_lea.vmem %s2669_s16, %s2353_s24 }
  0x34   : > { %s2715_s20 = sld [smem:[#allocation25_spill]] }
  0x3a   : > { %v740_v0 = vld [vmem:[%s2715_s20] sm:$0xff]  ;;  %v742_v1 = vld [vmem:[%s2715_s20 + $0x8] sm:$0xff]  ;;  %v744_v2 = vld [vmem:[%s2715_s20 + $0x10] sm:$0xff] }
  0x3b   : > { %741 = vst [vmem:[#allocation5 + $0x30] sm:$0xff] %v740_v0  ;;  %v746_v3 = vld [vmem:[%s2715_s20 + $0x18] sm:$0xff]  ;;  %v748_v4 = vld [vmem:[%s2715_s20 + $0x20] sm:$0xff]  ;;  %v750_v5 = vld [vmem:[%s2715_s20 + $0x28] sm:$0xff] }
  0x3c   : > { %743 = vst [vmem:[#allocation5] sm:$0xff] %v742_v1  ;;  %v752_v6 = vld [vmem:[%s2715_s20 + $0x30] sm:$0xff]  ;;  %v754_v7 = vld [vmem:[%s2715_s20 + $0x38] sm:$0xff] }
  0x3d   : > { %745 = vst [vmem:[#allocation5 + $0x18] sm:$0xff] %v744_v2 }
  0x3e   : > { %747 = vst [vmem:[#allocation5 + $0x10] sm:$0xff] %v746_v3 }
  0x3f   : > { %749 = vst [vmem:[#allocation5 + $0x8] sm:$0xff] %v748_v4 }
  0x40   : > { %751 = vst [vmem:[#allocation5 + $0x20] sm:$0xff] %v750_v5 }
  0x41   : > { %753 = vst [vmem:[#allocation5 + $0x28] sm:$0xff] %v752_v6 }
  0x42   : > { %755 = vst [vmem:[#allocation5 + $0x38] sm:$0xff] %v754_v7 }
  0x43   : > { %761 = vsyncadd [#allocation6], 1024 }
  0x44   : > { %2125 = dma.done.wait [#allocation6], 1024 }
  0x45   : > { %2126 = vsyncadd [#allocation6], 4294966272  ;;  %s2716_s26 = sld [smem:[#allocation22_spill]]  ;;  %s2163_s30 = smov 104   ;;  %v1914_v28 = vld [vmem:[#allocation5 + $0x10] sm:$0xff]  ;;  %v1913_v29 = vld [vmem:[#allocation5 + $0x18] sm:$0xff] }
  0x46   : > { %s2164_s1 = smov 112   ;;  %s2165_s25 = smov 120   ;;  %v1915_v26 = vld [vmem:[#allocation5 + $0x8] sm:$0xff]  ;;  %874 = vmatpush.bf16.msra.mxu1 %v1914_v28  ;;  %v1912_v30 = vld [vmem:[#allocation5] sm:$0xff]  ;;  %v1911_v31 = vld [vmem:[#allocation5 + $0x30] sm:$0xff]  ;;  %vm793_vm0 = vcmask 64512  }
  0x47   : > { %s2166_s4 = smov 8   ;;  %s2167_s2 = smov 16   ;;  %v1916_v24 = vld [vmem:[#allocation5 + $0x20] sm:$0xff]  ;;  %828 = vmatpush.bf16.msra.mxu0 %v1912_v30  ;;  %vm797_vm1 = vcmask 130048   ;;  %vm800_vm2 = vcmask 195584   ;;  %vm819_vm3 = vcmask 261120  }
  0x48   : > { %s2168_s0 = smov 24   ;;  %919 = vmatpush.bf16.msra.mxu2 %v1916_v24  ;;  %v1917_v27 = vld [vmem:[#allocation5 + $0x28] sm:$0xff]  ;;  %s2717_s18 = sld [smem:[#allocation26_spill]]  ;;  %vm1011_vm4 = vcmask 254976   ;;  %vm1007_vm5 = vcmask 261122   ;;  %v2169_v24 = vmov 32.0  }
  0x49   : > { %v1918_v25 = vld [vmem:[#allocation5 + $0x38] sm:$0xff] }
  0x4a   : > { %964 = vmatpush.bf16.msra.mxu3 %v1918_v25  ;;  %875 = vmatpush.bf16.msra.mxu1 %v1913_v29 }
  0x4b   : > { %v2441_v8 = vld [vmem:[%s2716_s26] sm:$0xff]  ;;  %v2444_v9 = vld [vmem:[%s2716_s26 + $0x8] sm:$0x7]  ;;  %829 = vmatpush.bf16.msra.mxu0 %v1911_v31 }
  0x4c   : > { %v2448_v10 = vpack.c.bf16 %v2441_v8, %v2441_v8  ;;  %v770_v11 = vpack.c.bf16 %v2444_v9, %v2444_v9  ;;  %920 = vmatpush.bf16.msra.mxu2 %v1915_v26 }
  0x4e   : > { %v773_v12 = vunpack.c.l.b16 %v2448_v10  ;;  %v774_v13 = vunpack.c.l.b16 %v770_v11  ;;  %965 = vmatpush.bf16.msra.mxu3 %v1917_v27  ;;  %v2022_v0 = vld [vmem:[%s2717_s18] ss:$0 sm:$0xff] }
  0x50   : > { %v835_v14 = vpack.c.b16 %v773_v12, %v773_v12  ;;  %v775_v15 = vpack.c.b16 %v774_v13, %v773_v12 }
  0x52   : > { %926 = vrot.lane.b32.xlu1 %v835_v14, %s2163_s30  ;;  %881 = vrot.lane.b32.xlu0 %v835_v14, %s2164_s1  ;;  %v777_v16 = vshrl.u32 %v775_v15, 16  ;;  %v779_v17 = vshll.u32 %v775_v15, 16  ;;  %v785_v18 = vrot.slane %v775_v15, 1 }
  0x54   : > { %v781_v19 = vrot.slane %v779_v17, 1  ;;  %930 = vrot.lane.b32.xlu2 %v785_v18, %s2165_s25  ;;  %v788_v20 = vrot.slane %v777_v16, 1  ;;  %v789_v21 = vrot.slane %v779_v17, 2 }
  0x56   : > { %v782_v22 = vor.u32 %v781_v19, %v777_v16  ;;  %v790_v23 = vor.u32 %v789_v21, %v788_v20 }
  0x5a   : > { %928 = vrot.lane.b32.xlu1 %v782_v22, %s2164_s1  ;;  %883 = vrot.lane.b32.xlu0 %v782_v22, %s2165_s25  ;;  %s2718_s1 = sld [smem:[#allocation27_spill]] }
  0x5c   : > { %885 = vrot.lane.b32.xlu2 %v790_v23, %s2166_s4 }
  0x62   : > { %836 = vrot.lane.b32.xlu0 %v835_v14, %s2165_s25  ;;  %838 = vrot.lane.b32.xlu1 %v785_v18, %s2166_s4 }
  0x64   : > { %840 = vrot.lane.b32.xlu2 %v790_v23, %s2167_s2 }
  0x6a   : > { %783 = vrot.lane.b32.xlu0 %v782_v22, %s2166_s4  ;;  %786 = vrot.lane.b32.xlu1 %v785_v18, %s2167_s2 }
  0x6c   : > { %791 = vrot.lane.b32.xlu2 %v790_v23, %s2168_s0 }
  0xae   : > { %v931_v32 = vpop.permute.xlu2 %930 }
  0xb6   : > { %v886_v35 = vpop.permute.xlu2 %885 }
  0xbe   : > { %v841_v44 = vpop.permute.xlu2 %840 }
  0xc4   : > { %v927_v33 = vpop.permute.xlu1 %926  ;;  %v882_v34 = vpop.permute.xlu0 %881 }
  0xc6   : > { %v792_v50 = vpop.permute.xlu2 %791 }
  0xcc   : > { %v929_v36 = vpop.permute.xlu1 %928  ;;  %v884_v37 = vpop.permute.xlu0 %883 }
  0xcd   : > { %v934_v38 = vsel %vm793_vm0, %v927_v33, %v929_v36  ;;  %v889_v39 = vsel %vm793_vm0, %v882_v34, %v884_v37 }
  0xce   : > { %v891_v40 = vsel %vm797_vm1, %v889_v39, %v785_v18  ;;  %v936_v41 = vsel %vm797_vm1, %v934_v38, %v931_v32 }
  0xcf   : > { %v893_v42 = vsel %vm800_vm2, %v891_v40, %v886_v35  ;;  %v938_v43 = vsel %vm800_vm2, %v936_v41, %v790_v23 }
  0xd0   : > { %1839 = vmatmul.msk.bf16.vlgmr.msra.gmra.mxu2 %vm819_vm3, %v893_v42  ;;  %1848 = vmatmul.msk.bf16.vlgmr.msra.gmra.mxu3 %vm819_vm3, %v938_v43 }
  0xd4   : > { %v837_v45 = vpop.permute.xlu0 %836  ;;  %v839_v46 = vpop.permute.xlu1 %838 }
  0xd5   : > { %v844_v47 = vsel %vm793_vm0, %v837_v45, %v782_v22 }
  0xd6   : > { %v846_v48 = vsel %vm797_vm1, %v844_v47, %v839_v46 }
  0xd7   : > { %v848_v49 = vsel %vm800_vm2, %v846_v48, %v841_v44 }
  0xd8   : > { %1830 = vmatmul.msk.bf16.vlgmr.msra.gmra.mxu1 %vm819_vm3, %v848_v49 }
  0xdc   : > { %v784_v51 = vpop.permute.xlu0 %783  ;;  %v787_v52 = vpop.permute.xlu1 %786 }
  0xdd   : > { %v796_v53 = vsel %vm793_vm0, %v2448_v10, %v784_v51 }
  0xde   : > { %v799_v54 = vsel %vm797_vm1, %v796_v53, %v787_v52  ;;  %v2023_v53 = vld [vmem:[%s2718_s1] ss:$0 sm:$0xff] }
  0xdf   : > { %v802_v55 = vsel %vm800_vm2, %v799_v54, %v792_v50 }
  0xe0   : > { %1821 = vmatmul.msk.bf16.vlgmr.msra.gmra.mxu0 %vm819_vm3, %v802_v55 }
 0x153   : > { %v922_v56 = vpop.f32.mrf.mxu2  ;;  %v967_v57 = vpop.f32.mrf.mxu3 }
 0x154   : > { %980 = vrot.lane.b32.xlu2 %v967_v57, %s2168_s0  ;;  %976 = vrot.lane.b32.xlu1 %v922_v56, %s2167_s2  ;;  %s2719_s2 = sld [smem:[#allocation28_spill]] }
 0x155   : > { %v877_v58 = vpop.f32.mrf.mxu1 }
 0x156   : > { %972 = vrot.lane.b32.xlu0 %v877_v58, %s2166_s4 }
 0x15a   : > { %v2024_v56 = vld [vmem:[%s2719_s2] ss:$0 sm:$0xff] }
 0x15b   : > { %v924_v59 = vpop.f32.mrf.mxu2  ;;  %v969_v60 = vpop.f32.mrf.mxu3 }
 0x15d   : > { %v879_v61 = vpop.f32.mrf.mxu1  ;;  %v831_v62 = vpop.f32.mrf.mxu0 }
 0x165   : > { %v833_v63 = vpop.f32.mrf.mxu0 }
 0x1ae   : > { %v981_v4 = vpop.permute.xlu2 %980 }
 0x1c6   : > { %v977_v2 = vpop.permute.xlu1 %976 }
 0x1c8   : > { %v973_v1 = vpop.permute.xlu0 %972 }
 0x1c9   : > { %v983_v3 = vsel %vm793_vm0, %v831_v62, %v973_v1 }
 0x1ca   : > { %v984_v5 = vsel %vm797_vm1, %v983_v3, %v977_v2 }
 0x1cb   : > { %v985_v6 = vsel %vm800_vm2, %v984_v5, %v981_v4 }
 0x1cc   : > { %v990_v7 = vadd.f32 %v2022_v0, %v985_v6 }
 0x1ce   : > { %v992_v10 = vmul.f32 0.044715, %v990_v7  ;;  %v991_v16 = vmul.f32 0.5, %v990_v7 }
 0x1d0   : > { %v993_v11 = vmul.f32 %v992_v10, %v990_v7 }
 0x1d2   : > { %v994_v12 = vmul.f32 %v993_v11, %v990_v7 }
 0x1d4   : > { %v995_v13 = vadd.f32 %v994_v12, %v990_v7 }
 0x1d6   : > { %v996_v14 = vmul.f32 0.7978846, %v995_v13 }
 0x1d8   : > { %2025 = vtanh.f32 %v996_v14 }
 0x1d9   : > { %2027 = vrcp.f32 %v2169_v24 }
 0x1de   : > { %v2026_v15 = vpop.eup %2025 }
 0x1df   : > { %v998_v17 = vadd.f32 1.0, %v2026_v15  ;;  %v2028_v25 = vpop.eup %2027 }
 0x1e0   : > { %v1016_v26 = vmul.f32 32.0, %v2028_v25  ;;  %vm1020_vm6 = vweird.f32 %v2028_v25 }
 0x1e1   : > { %v999_v18 = vmul.f32 %v998_v17, %v991_v16 }
 0x1e2   : > { %v1017_v27 = vsub.f32 1.0, %v1016_v26 }
 0x1e3   : > { %v1001_v19 = vrot.slane %v999_v18, 6 }
 0x1e4   : > { %v1018_v28 = vmul.f32 %v2028_v25, %v1017_v27 }
 0x1e5   : > { %v1004_v20 = vadd.f32 %v1001_v19, %v2444_v9  ;;  %v1003_v21 = vadd.f32 %v1001_v19, %v2441_v8 }
 0x1e6   : > { %v1019_v29 = vadd.f32 %v2028_v25, %v1018_v28 }
 0x1e7   : > { %v1012_v22 = vsel %vm1011_vm4, %v1004_v20, 0.0  ;;  %v1008_v23 = vsel %vm1007_vm5, %v1003_v21, 0.0 }
 0x1e8   : > { %1013 = vadd.xlane.f32.xlu1 %v1012_v22  ;;  %1009 = vadd.xlane.f32.xlu0 %v1008_v23  ;;  %v1021_v30 = vsel %vm1020_vm6, %v2028_v25, %v1019_v29 }
 0x25b   : > { %v1014_v31 = vpop.xlane.xlu1 %1013  ;;  %v1010_v32 = vpop.xlane.xlu0 %1009 }
 0x25c   : > { %v1022_v9 = vmul.f32 %v1021_v30, %v1010_v32  ;;  %v1023_v33 = vmul.f32 %v1021_v30, %v1014_v31 }
 0x25e   : > { %v1024_v8 = vsub.f32 %v1003_v21, %v1022_v9  ;;  %v1025_v35 = vsub.f32 %v1004_v20, %v1023_v33 }
 0x260   : > { %v1026_v34 = vmul.f32 %v1024_v8, %v1024_v8  ;;  %v1027_v37 = vmul.f32 %v1025_v35, %v1025_v35 }
 0x262   : > { %v1028_v36 = vsel %vm1007_vm5, %v1026_v34, 0.0  ;;  %v1031_v38 = vsel %vm1011_vm4, %v1027_v37, 0.0 }
 0x263   : > { %1029 = vadd.xlane.f32.xlu2 %v1028_v36 }
 0x26b   : > { %1032 = vadd.xlane.f32.xlu2 %v1031_v38 }
 0x2d6   : > { %v1030_v39 = vpop.xlane.xlu2 %1029 }
 0x2d7   : > { %v1034_v40 = vmul.f32 %v1030_v39, %v1021_v30 }
 0x2d9   : > { %v1036_v41 = vadd.f32 1e-05, %v1034_v40 }
 0x2db   : > { %2029 = vrsqrt.f32 %v1036_v41  ;;  %vm1044_vm8 = vweird.f32 %v1036_v41 }
 0x2de   : > { %v1033_v42 = vpop.xlane.xlu2 %1032 }
 0x2df   : > { %v1035_v43 = vmul.f32 %v1033_v42, %v1021_v30 }
 0x2e1   : > { %v2030_v44 = vpop.eup %2029  ;;  %v1037_v45 = vadd.f32 1e-05, %v1035_v43 }
 0x2e2   : > { %v1039_v46 = vmul.f32 %v2030_v44, %v1036_v41  ;;  %vm1045_vm7 = vweird.f32 %v2030_v44 }
 0x2e3   : > { %2031 = vrsqrt.f32 %v1037_v45  ;;  %vm1046_vm9 = vmor %vm1044_vm8, %vm1045_vm7  ;;  %vm1054_vm11 = vweird.f32 %v1037_v45 }
 0x2e4   : > { %v1040_v47 = vmul.f32 %v2030_v44, %v1039_v46 }
 0x2e6   : > { %v1041_v48 = vmul.f32 0.5, %v1040_v47 }
 0x2e8   : > { %v1042_v49 = vsub.f32 1.5, %v1041_v48 }
 0x2e9   : > { %v2032_v50 = vpop.eup %2031 }
 0x2ea   : > { %v1043_v51 = vmul.f32 %v2030_v44, %v1042_v49  ;;  %v1049_v52 = vmul.f32 %v2032_v50, %v1037_v45  ;;  %vm1055_vm10 = vweird.f32 %v2032_v50 }
 0x2eb   : > { %vm1056_vm12 = vmor %vm1054_vm11, %vm1055_vm10 }
 0x2ec   : > { %v1047_v54 = vsel %vm1046_vm9, %v2030_v44, %v1043_v51  ;;  %v1050_v55 = vmul.f32 %v2032_v50, %v1049_v52 }
 0x2ed   : > { %v1058_v57 = vmul.f32 %v1047_v54, %v1024_v8 }
 0x2ee   : > { %v1051_v58 = vmul.f32 0.5, %v1050_v55 }
 0x2ef   : > { %v1063_v59 = vmul.f32 %v2023_v53, %v1058_v57 }
 0x2f0   : > { %v1052_v60 = vsub.f32 1.5, %v1051_v58 }
 0x2f1   : > { %v1068_v61 = vadd.f32 %v2024_v56, %v1063_v59 }
 0x2f2   : > { %v1053_v62 = vmul.f32 %v2032_v50, %v1052_v60 }
 0x2f3   : > { %1070 = vst.msk [vmem:[#allocation2 - $0x2] sm:$0xfc] %vm1007_vm5, %v1068_v61 }
 0x2f4   : > { %v1057_v63 = vsel %vm1056_vm12, %v2032_v50, %v1053_v62 }
 0x2f5   : > { %v1059_v0 = vmul.f32 %v1057_v63, %v1025_v35 }
 0x2f7   : > { %v1064_v1 = vmul.f32 %v2023_v53, %v1059_v0 }
 0x2f9   : > { %v1069_v2 = vadd.f32 %v2024_v56, %v1064_v1 }
 0x2fb   : > { %1071 = vst.msk [vmem:[#allocation2 + $0x6] sm:$0x3] %vm1011_vm4, %v1069_v2 }
 0x2fc PF: > { %s2720_s0 = sld [smem:[#allocation23_spill]]  ;;  %vm1094_vm13 = vcmask 261120   ;;  %s2721_s18 = scalar_lea.vmem %s2659_s6, %s2353_s24  ;;  %vm1119_vm14 = vcmask 64512   ;;  %vm1156_vm15 = vcmask 1043456   ;;  %vm1366_vm0 = vcmask 130048  }
 0x2fd   : > { %v2033_v7 = vld [vmem:[%s2721_s18] ss:$0 sm:$0xff]  ;;  %s2170_s26 = smov 96   ;;  %s2171_s30 = smov 104   ;;  %vm1369_vm1 = vcmask 195584   ;;  %vm1530_vm6 = vcmask 523264  }
 0x2fe   : > { %s2172_s1 = smov 120   ;;  %s2173_s25 = smov 88  }
 0x2ff   : > { %s2174_s4 = smov 80   ;;  %s2175_s2 = smov 72  }
 0x300   : > { %s2177_s23 = smov 64   ;;  %s2178_s7 = smov 40  }
 0x301   : > { %s2179_s18 = smov 56   ;;  %p1901_p1 = scmp.ne.s32.totalorder %s2145_s27, 1 }
 0x302   : > { %v1920_v3 = vld [vmem:[%s2720_s0 + $0x8] sm:$0xff]  ;;  %v1919_v4 = vld [vmem:[%s2720_s0] sm:$0xff]  ;;  %s2176_s0 = smov 112  }
 0x303   : > { %v2501_v5 = vld [vmem:[#allocation2] sm:$0xff]  ;;  %1104 = vmatpush.bf16.msra.mxu0 %v1920_v3 }
 0x304   : > { %v1073_v6 = vpack.c.bf16 %v2501_v5, %v2501_v5 }
 0x307   : > { %1105 = vmatpush.bf16.msra.mxu0 %v1919_v4 }
 0x30a   : > { %1857 = vmatmul.msk.bf16.vlgmr.msra.gmra.mxu0 %vm1094_vm13, %v1073_v6 }
 0x387   : > { %v1107_v10 = vpop.f32.mrf.mxu0 }
 0x388   : > { %v1108_v11 = vadd.f32 %v2033_v7, %v1107_v10 }
 0x38a   : > { %v1111_v12 = vmul.f32 0.35355338, %v1108_v11  ;;  %v1113_v13 = vpack.c.bf16 %v1108_v11, %v1108_v11 }
 0x38c   : > { %v1112_v14 = vpack.c.bf16 %v1111_v12, %v1111_v12  ;;  %v1115_v15 = vunpack.c.l.b16 %v1113_v13 }
 0x38e   : > { %v2511_v16 = vpack.c.b16 %v1115_v15, %v1115_v15  ;;  %v1175_v17 = vunpack.c.l.b16 %v1112_v14 }
 0x38f   : > { %v1109_v18 = vpop.f32.mrf.mxu0 }
 0x390   : > { %1117 = vrot.lane.b32.xlu0 %v2511_v16, %s2170_s26  ;;  %v1176_v19 = vpack.c.b16 %v1175_v17, %v1175_v17  ;;  %s2180_s26 = smov 48  }
 0x392   : > { %1291 = vrot.lane.b32.xlu2 %v1176_v19, %s2171_s30  ;;  %1177 = vrot.lane.b32.xlu1 %v1176_v19, %s2172_s1  ;;  %s2181_s30 = smov 8   ;;  %s2182_s1 = smov 16  }
 0x398   : > { %1179 = vrot.lane.b32.xlu0 %v2511_v16, %s2173_s25  ;;  %s2183_s25 = smov 24  }
 0x39a   : > { %1236 = vrot.lane.b32.xlu2 %v2511_v16, %s2174_s4  ;;  %1293 = vrot.lane.b32.xlu1 %v2511_v16, %s2175_s2 }
 0x3a0   : > { %1234 = vrot.lane.b32.xlu0 %v1176_v19, %s2176_s0  ;;  %s2722_s0 = scalar_lea.vmem %s2661_s8, %s2353_s24 }
 0x3ec   : > { %v1292_v20 = vpop.permute.xlu2 %1291 }
 0x3f4   : > { %v1237_v21 = vpop.permute.xlu2 %1236 }
 0x3f5   : > { %v1242_v22 = vsel %vm1119_vm14, %v1237_v21, 0 }
 0x3f6   : > { %1251 = vmatpush.bf16.xpose.msrb.mxu0 %v1242_v22 }
 0x402   : > { %v1118_v23 = vpop.permute.xlu0 %1117 }
 0x403   : > { %v1124_v24 = vsel %vm1119_vm14, %v1118_v23, 0 }
 0x404   : > { %1133 = vmatpush.bf16.xpose.msra.mxu1 %v1124_v24  ;;  %v1178_v25 = vpop.permute.xlu1 %1177 }
 0x40a   : > { %v1180_v26 = vpop.permute.xlu0 %1179 }
 0x40b   : > { %1858 = vmatmul.msk.bf16.vlgmr.msra.gmra.mxu1 %vm1119_vm14, %v1112_v14  ;;  %v1185_v27 = vsel %vm1119_vm14, %v1180_v26, 0 }
 0x40c   : > { %1194 = vmatpush.bf16.xpose.msra.mxu3 %v1185_v27  ;;  %v1294_v28 = vpop.permute.xlu1 %1293 }
 0x40d   : > { %v1299_v29 = vsel %vm1119_vm14, %v1294_v28, 0 }
 0x412   : > { %v1235_v30 = vpop.permute.xlu0 %1234 }
 0x413   : > { %1860 = vmatmul.msk.bf16.vlgmr.msra.gmra.mxu3 %vm1119_vm14, %v1178_v25  ;;  %1862 = vmatmul.msk.bf16.vlgmr.msrb.gmra.mxu0 %vm1119_vm14, %v1235_v30 }
 0x414   : > { %1308 = vmatpush.bf16.xpose.msrb.mxu3 %v1299_v29 }
 0x423   : > { %1864 = vmatmul.msk.bf16.vlgmr.msrb.gmra.mxu3 %vm1119_vm14, %v1292_v20 }
 0x488   : > { %v1135_v31 = vpop.f32.mrf.mxu1 }
 0x489   : > { %v1139_v32 = vsel %vm1119_vm14, %v1135_v31, -inf }
 0x48a   : > { %1140 = vmax.xlane.f32.xlu1 %v1139_v32 }
 0x490   : > { %v1137_v9 = vpop.f32.mrf.mxu1  ;;  %v1253_v33 = vpop.f32.mrf.mxu0 }
 0x491   : > { %v1257_v37 = vsel %vm1119_vm14, %v1253_v33, -inf }
 0x496   : > { %v1196_v8 = vpop.f32.mrf.mxu3 }
 0x497   : > { %v1200_v34 = vsel %vm1119_vm14, %v1196_v8, -inf }
 0x498   : > { %v1255_v35 = vpop.f32.mrf.mxu0  ;;  %1201 = vmax.xlane.f32.xlu2 %v1200_v34 }
 0x49e   : > { %v1198_v36 = vpop.f32.mrf.mxu3 }
 0x4a0   : > { %1258 = vmax.xlane.f32.xlu2 %v1257_v37 }
 0x4a6   : > { %v1310_v38 = vpop.f32.mrf.mxu3 }
 0x4a7   : > { %v1314_v39 = vsel %vm1119_vm14, %v1310_v38, -inf }
 0x4a8   : > { %1315 = vmax.xlane.f32.xlu0 %v1314_v39  ;;  %v1922_v39 = vld [vmem:[%s2373_s22 + $0x8] sm:$0xff] }
 0x4a9   : > { %1400 = vmatpush.bf16.msra.mxu0 %v1922_v39 }
 0x4ae   : > { %v1312_v40 = vpop.f32.mrf.mxu3 }
 0x4af   : > { %v1921_v40 = vld [vmem:[%s2373_s22] sm:$0xff] }
 0x4b0   : > { %1401 = vmatpush.bf16.msra.mxu0 %v1921_v40 }
 0x4b8   : > { %1151 = vrot.lane.b32.xlu2 %v2511_v16, %s2177_s23  ;;  %s2723_s23 = scalar_lea.vmem %s2662_s9, %s2353_s24 }
 0x4c0   : > { %1326 = vrot.lane.b32.xlu2 %v2511_v16, %s2178_s7 }
 0x4fd   : > { %v1141_v41 = vpop.xlane.xlu1 %1140 }
 0x4fe   : > { %v1142_v42 = vsub.f32 %v1135_v31, %v1141_v41 }
 0x500   : > { %v1143_v43 = vmul.f32 1.442695, %v1142_v42 }
 0x502   : > { %2041 = vpow2.f32 %v1143_v43 }
 0x508   : > { %v2042_v44 = vpop.eup %2041 }
 0x509   : > { %v1145_v45 = vsel %vm1119_vm14, %v2042_v44, 0.0 }
 0x50a   : > { %1146 = vadd.xlane.f32.xlu1 %v1145_v45 }
 0x50b   : > { %v1202_v46 = vpop.xlane.xlu2 %1201 }
 0x50c   : > { %v1203_v49 = vsub.f32 %v1196_v8, %v1202_v46 }
 0x50e   : > { %v1204_v51 = vmul.f32 1.442695, %v1203_v49 }
 0x513   : > { %v1259_v47 = vpop.xlane.xlu2 %1258 }
 0x514   : > { %v1260_v48 = vsub.f32 %v1253_v33, %v1259_v47 }
 0x516   : > { %v1261_v50 = vmul.f32 1.442695, %v1260_v48  ;;  %v2034_v48 = vld [vmem:[%s2722_s0] ss:$0 sm:$0xff] }
 0x518   : > { %2043 = vpow2.f32 %v1261_v50 }
 0x519   : > { %2045 = vpow2.f32 %v1204_v51 }
 0x51b   : > { %v1152_v52 = vpop.permute.xlu2 %1151  ;;  %v1316_v53 = vpop.xlane.xlu0 %1315 }
 0x51c   : > { %v1158_v54 = vsel %vm1156_vm15, %v1152_v52, 0  ;;  %v1317_v56 = vsub.f32 %v1310_v38, %v1316_v53 }
 0x51d   : > { %1167 = vmatpush.bf16.msra.mxu2 %v1158_v54  ;;  %v2184_v54 = vmov 32.0  }
 0x51e   : > { %v2044_v55 = vpop.eup %2043  ;;  %v1318_v58 = vmul.f32 1.442695, %v1317_v56 }
 0x51f   : > { %v1263_v57 = vsel %vm1119_vm14, %v2044_v55, 0.0  ;;  %v2046_v59 = vpop.eup %2045 }
 0x520   : > { %1264 = vadd.xlane.f32.xlu0 %v1263_v57  ;;  %2047 = vpow2.f32 %v1318_v58  ;;  %v1206_v60 = vsel %vm1119_vm14, %v2046_v59, 0.0 }
 0x523   : > { %1212 = vrot.lane.b32.xlu1 %v2511_v16, %s2179_s18  ;;  %v1327_v4 = vpop.permute.xlu2 %1326 }
 0x524   : > { %v1332_v10 = vsel %vm1156_vm15, %v1327_v4, 0 }
 0x526   : > { %v2048_v61 = vpop.eup %2047 }
 0x527   : > { %v1320_v62 = vsel %vm1119_vm14, %v2048_v61, 0.0 }
 0x528   : > { %1207 = vadd.xlane.f32.xlu0 %v1206_v60 }
 0x530   : > { %1321 = vadd.xlane.f32.xlu0 %v1320_v62 }
 0x544   : > { %1269 = vrot.lane.b32.xlu0 %v2511_v16, %s2180_s26  ;;  %s2724_s26 = scalar_lea.vmem %s2663_s10, %s2353_s24 }
 0x57d   : > { %v1147_v63 = vpop.xlane.xlu1 %1146 }
 0x57e   : > { %2049 = vrcp.f32 %v1147_v63 }
 0x584   : > { %v2050_v0 = vpop.eup %2049 }
 0x585   : > { %v1149_v1 = vmul.f32 %v2050_v0, %v2042_v44 }
 0x587   : > { %v1150_v2 = vpack.c.bf16 %v1149_v1, %v1149_v1  ;;  %v1924_v1 = vld [vmem:[%s2390_s21 + $0x8] sm:$0xff] }
 0x589   : > { %1859 = vmatmul.msk.bf16.vlgmr.msra.gmra.mxu2 %vm1119_vm14, %v1150_v2  ;;  %v1923_v2 = vld [vmem:[%s2390_s21] sm:$0xff] }
 0x593   : > { %v1265_v3 = vpop.xlane.xlu0 %1264 }
 0x595   : > { %v1213_v6 = vpop.permute.xlu1 %1212 }
 0x596   : > { %v1218_v7 = vsel %vm1156_vm15, %v1213_v6, 0 }
 0x597   : > { %1227 = vmatpush.bf16.msrb.mxu2 %v1218_v7 }
 0x59b   : > { %1341 = vmatpush.bf16.msra.mxu2 %v1332_v10  ;;  %v1208_v11 = vpop.xlane.xlu0 %1207 }
 0x59c   : > { %2051 = vrcp.f32 %v1208_v11 }
 0x5a2   : > { %v2052_v12 = vpop.eup %2051 }
 0x5a3   : > { %v1210_v13 = vmul.f32 %v2052_v12, %v2046_v59  ;;  %v1322_v14 = vpop.xlane.xlu0 %1321 }
 0x5a4   : > { %2053 = vrcp.f32 %v1322_v14 }
 0x5a5   : > { %v1211_v15 = vpack.c.bf16 %v1210_v13, %v1210_v13  ;;  %2055 = vrcp.f32 %v1265_v3 }
 0x5a6   : > { %2057 = vrcp.f32 %v2184_v54 }
 0x5a7   : > { %1861 = vmatmul.msk.bf16.vlgmr.msrb.gmra.mxu2 %vm1119_vm14, %v1211_v15  ;;  %v2035_v15 = vld [vmem:[%s2723_s23] ss:$0 sm:$0xff] }
 0x5aa   : > { %v2054_v16 = vpop.eup %2053 }
 0x5ab   : > { %v1324_v17 = vmul.f32 %v2054_v16, %v2048_v61  ;;  %v2056_v18 = vpop.eup %2055 }
 0x5ac   : > { %v1267_v19 = vmul.f32 %v2056_v18, %v2044_v55  ;;  %v2058_v55 = vpop.eup %2057 }
 0x5ad   : > { %v1325_v20 = vpack.c.bf16 %v1324_v17, %v1324_v17  ;;  %v1414_v56 = vmul.f32 32.0, %v2058_v55  ;;  %vm1418_vm2 = vweird.f32 %v2058_v55  ;;  %v2036_v17 = vld [vmem:[%s2724_s26] ss:$0 sm:$0xff] }
 0x5ae   : > { %v1268_v23 = vpack.c.bf16 %v1267_v19, %v1267_v19 }
 0x5af   : > { %v1415_v57 = vsub.f32 1.0, %v1414_v56 }
 0x5b1   : > { %v1416_v58 = vmul.f32 %v2058_v55, %v1415_v57 }
 0x5b3   : > { %v1417_v59 = vadd.f32 %v2058_v55, %v1416_v58  ;;  %v2039_v58 = vld [vmem:[%s721_s17] ss:$0 sm:$0xff] }
 0x5b5   : > { %v2556_v60 = vsel %vm1418_vm2, %v2058_v55, %v1417_v59 }
 0x5b6   : > { %v1270_v21 = vpop.permute.xlu0 %1269 }
 0x5b7   : > { %1865 = vmatmul.msk.bf16.vlgmr.msra.gmra.mxu2 %vm1119_vm14, %v1325_v20  ;;  %v1275_v22 = vsel %vm1156_vm15, %v1270_v21, 0 }
 0x5b8   : > { %1284 = vmatpush.bf16.msrb.mxu1 %v1275_v22  ;;  %v1928_v22 = vld [vmem:[%s2404_s19 + $0x18] sm:$0xff] }
 0x5b9   : > { %1538 = vmatpush.bf16.msra.mxu3 %v1928_v22 }
 0x5bb   : > { %1863 = vmatmul.msk.bf16.vlgmr.msrb.gmra.mxu1 %vm1119_vm14, %v1268_v23  ;;  %v1927_v23 = vld [vmem:[%s2404_s19 + $0x10] sm:$0xff] }
 0x5bc   : > { %1477 = vmatpush.bf16.msra.mxu1 %v1924_v1 }
 0x5bd   : > { %1539 = vmatpush.bf16.msra.mxu3 %v1927_v23 }
 0x5c0   : > { %1478 = vmatpush.bf16.msra.mxu1 %v1923_v2 }
 0x60c   : > { %v1169_v24 = vpop.f32.mrf.mxu2 }
 0x60d   : > { %v1173_v42 = vpack.c.bf16 %v1169_v24, %v1169_v24  ;;  %v1926_v24 = vld [vmem:[%s2404_s19 + $0x8] sm:$0xff] }
 0x60e   : > { %1540 = vmatpush.bf16.msra.mxu3 %v1926_v24 }
 0x614   : > { %v1171_v25 = vpop.f32.mrf.mxu2 }
 0x615   : > { %v1925_v25 = vld [vmem:[%s2404_s19] sm:$0xff] }
 0x616   : > { %1541 = vmatpush.bf16.msra.mxu3 %v1925_v25 }
 0x62a   : > { %v1229_v26 = vpop.f32.mrf.mxu2 }
 0x62b   : > { %v1233_v27 = vpack.c.bf16 %v1229_v26, %v1229_v26  ;;  %v2037_v26 = vld [vmem:[%s710_s28] ss:$0 sm:$0xff]  ;;  %s2725_s28 = scalar_lea.vmem %s2667_s14, %s2353_s24 }
 0x62d   : > { %v1349_v28 = vunpack.c.l.b16 %v1233_v27 }
 0x62f   : > { %v1350_v29 = vpack.c.b16 %v1349_v28, %v1349_v28 }
 0x631   : > { %1351 = vrot.lane.b32.xlu1 %v1350_v29, %s2181_s30 }
 0x632   : > { %v1231_v30 = vpop.f32.mrf.mxu2 }
 0x638   : > { %v1286_v31 = vpop.f32.mrf.mxu1 }
 0x639   : > { %v1290_v32 = vpack.c.bf16 %v1286_v31, %v1286_v31 }
 0x63a   : > { %v1343_v9 = vpop.f32.mrf.mxu2 }
 0x63b   : > { %v1354_v33 = vunpack.c.l.b16 %v1290_v32  ;;  %v1347_v8 = vpack.c.bf16 %v1343_v9, %v1343_v9 }
 0x63d   : > { %v1355_v34 = vpack.c.b16 %v1354_v33, %v1354_v33  ;;  %v1359_v35 = vunpack.c.l.b16 %v1347_v8 }
 0x63f   : > { %v1360_v36 = vpack.c.b16 %v1359_v35, %v1359_v35  ;;  %1356 = vrot.lane.b32.xlu2 %v1355_v34, %s2182_s1 }
 0x640   : > { %v1288_v37 = vpop.f32.mrf.mxu1 }
 0x641   : > { %1361 = vrot.lane.b32.xlu1 %v1360_v36, %s2183_s25 }
 0x642   : > { %v1345_v38 = vpop.f32.mrf.mxu2 }
 0x643   : > { %v2038_v38 = vld [vmem:[%s2725_s28] ss:$0 sm:$0xff] }
 0x699   : > { %v1357_v44 = vpop.permute.xlu2 %1356 }
 0x6a3   : > { %v1352_v41 = vpop.permute.xlu1 %1351 }
 0x6a4   : > { %v1365_v43 = vsel %vm1119_vm14, %v1173_v42, %v1352_v41 }
 0x6a5   : > { %v1368_v46 = vsel %vm1366_vm0, %v1365_v43, %v1357_v44 }
 0x6b3   : > { %v1362_v45 = vpop.permute.xlu1 %1361 }
 0x6b4   : > { %v1371_v47 = vsel %vm1369_vm1, %v1368_v46, %v1362_v45 }
 0x6b5   : > { %1874 = vmatmul.msk.bf16.vlgmr.msra.gmra.mxu0 %vm1094_vm13, %v1371_v47 }
 0x732   : > { %v1403_v49 = vpop.f32.mrf.mxu0 }
 0x733   : > { %v1404_v50 = vadd.f32 %v2034_v48, %v1403_v49 }
 0x735   : > { %v1407_v51 = vadd.f32 %v1404_v50, %v2501_v5 }
 0x737   : > { %v1410_v52 = vsel %vm1094_vm13, %v1407_v51, 0.0 }
 0x738   : > { %1411 = vadd.xlane.f32.xlu2 %v1410_v52 }
 0x73a   : > { %v1405_v53 = vpop.f32.mrf.mxu0 }
 0x7ab   : > { %v1412_v61 = vpop.xlane.xlu2 %1411 }
 0x7ac   : > { %v1420_v62 = vmul.f32 %v2556_v60, %v1412_v61 }
 0x7ae   : > { %v1421_v5 = vsub.f32 %v1407_v51, %v1420_v62 }
 0x7b0   : > { %v1422_v63 = vmul.f32 %v1421_v5, %v1421_v5 }
 0x7b2   : > { %v1423_v0 = vsel %vm1094_vm13, %v1422_v63, 0.0 }
 0x7b3   : > { %1424 = vadd.xlane.f32.xlu1 %v1423_v0 }
 0x826   : > { %v1425_v3 = vpop.xlane.xlu1 %1424 }
 0x827   : > { %v1426_v4 = vmul.f32 %v1425_v3, %v2556_v60 }
 0x829   : > { %v1427_v6 = vadd.f32 1e-05, %v1426_v4 }
 0x82b   : > { %2059 = vrsqrt.f32 %v1427_v6  ;;  %vm1434_vm4 = vweird.f32 %v1427_v6 }
 0x831   : > { %v2060_v7 = vpop.eup %2059 }
 0x832   : > { %v1429_v10 = vmul.f32 %v2060_v7, %v1427_v6  ;;  %vm1435_vm3 = vweird.f32 %v2060_v7 }
 0x833   : > { %vm1436_vm5 = vmor %vm1434_vm4, %vm1435_vm3 }
 0x834   : > { %v1430_v11 = vmul.f32 %v2060_v7, %v1429_v10 }
 0x836   : > { %v1431_v12 = vmul.f32 0.5, %v1430_v11 }
 0x838   : > { %v1432_v13 = vsub.f32 1.5, %v1431_v12 }
 0x83a   : > { %v1433_v14 = vmul.f32 %v2060_v7, %v1432_v13 }
 0x83c   : > { %v1437_v16 = vsel %vm1436_vm5, %v2060_v7, %v1433_v14 }
 0x83d   : > { %v1438_v18 = vmul.f32 %v1437_v16, %v1421_v5 }
 0x83f   : > { %v1442_v19 = vmul.f32 %v2035_v15, %v1438_v18 }
 0x841   : > { %v1446_v20 = vadd.f32 %v2036_v17, %v1442_v19 }
 0x843   : > { %v1447_v21 = vpack.c.bf16 %v1446_v20, %v1446_v20 }
 0x845   : > { %1883 = vmatmul.msk.bf16.vlgmr.msra.gmra.mxu1 %vm1094_vm13, %v1447_v21 }
 0x8c2   : > { %v1480_v27 = vpop.f32.mrf.mxu1 }
 0x8c3   : > { %v1481_v28 = vadd.f32 %v2037_v26, %v1480_v27 }
 0x8c5   : > { %v1485_v29 = vmul.f32 0.044715, %v1481_v28  ;;  %v1484_v34 = vmul.f32 0.5, %v1481_v28 }
 0x8c7   : > { %v1486_v30 = vmul.f32 %v1485_v29, %v1481_v28 }
 0x8c9   : > { %v1487_v31 = vmul.f32 %v1486_v30, %v1481_v28 }
 0x8ca   : > { %v1482_v32 = vpop.f32.mrf.mxu1 }
 0x8cb   : > { %v1488_v9 = vadd.f32 %v1487_v31, %v1481_v28 }
 0x8cd   : > { %v1489_v33 = vmul.f32 0.7978846, %v1488_v9 }
 0x8cf   : > { %2061 = vtanh.f32 %v1489_v33 }
 0x8d5   : > { %v2062_v8 = vpop.eup %2061 }
 0x8d6   : > { %v1491_v35 = vadd.f32 1.0, %v2062_v8 }
 0x8d8   : > { %v1492_v36 = vmul.f32 %v1491_v35, %v1484_v34 }
 0x8da   : > { %v1493_v37 = vpack.c.bf16 %v1492_v36, %v1492_v36 }
 0x8dc   : > { %1900 = vmatmul.msk.bf16.vlgmr.msra.gmra.mxu3 %vm1530_vm6, %v1493_v37 }
 0x95f   : > { %v1543_v39 = vpop.f32.mrf.mxu3 }
 0x960   : > { %v1544_v40 = vadd.f32 %v2038_v38, %v1543_v39 }
 0x962   : > { %v1547_v41 = vadd.f32 %v1544_v40, %v1446_v20 }
 0x964   : > { %v1550_v42 = vsel %vm1094_vm13, %v1547_v41, 0.0 }
 0x965   : > { %1551 = vadd.xlane.f32.xlu0 %v1550_v42 }
 0x967   : > { %v1545_v43 = vpop.f32.mrf.mxu3 }
 0x9d8   : > { %v1552_v44 = vpop.xlane.xlu0 %1551 }
 0x9d9   : > { %v1553_v45 = vmul.f32 %v1552_v44, %v2556_v60 }
 0x9db   : > { %v1554_v46 = vsub.f32 %v1547_v41, %v1553_v45 }
 0x9dd   : > { %v1555_v47 = vmul.f32 %v1554_v46, %v1554_v46 }
 0x9df   : > { %v1556_v48 = vsel %vm1094_vm13, %v1555_v47, 0.0 }
 0x9e0   : > { %1557 = vadd.xlane.f32.xlu2 %v1556_v48 }
 0xa53   : > { %v1558_v49 = vpop.xlane.xlu2 %1557 }
 0xa54   : > { %v1559_v50 = vmul.f32 %v1558_v49, %v2556_v60  ;;  %v2040_v60 = vld [vmem:[%s724_s5] ss:$0 sm:$0xff] }
 0xa56   : > { %v1560_v51 = vadd.f32 1e-05, %v1559_v50 }
 0xa58   : > { %2063 = vrsqrt.f32 %v1560_v51  ;;  %vm1567_vm8 = vweird.f32 %v1560_v51 }
 0xa5e   : > { %v2064_v52 = vpop.eup %2063 }
 0xa5f   : > { %v1562_v53 = vmul.f32 %v2064_v52, %v1560_v51  ;;  %vm1568_vm7 = vweird.f32 %v2064_v52 }
 0xa60   : > { %vm1569_vm9 = vmor %vm1567_vm8, %vm1568_vm7 }
 0xa61   : > { %v1563_v54 = vmul.f32 %v2064_v52, %v1562_v53 }
 0xa63   : > { %v1564_v55 = vmul.f32 0.5, %v1563_v54 }
 0xa65   : > { %v1565_v56 = vsub.f32 1.5, %v1564_v55 }
 0xa67   : > { %v1566_v57 = vmul.f32 %v2064_v52, %v1565_v56 }
 0xa69   : > { %v1570_v59 = vsel %vm1569_vm9, %v2064_v52, %v1566_v57 }
 0xa6a   : > { %v1571_v61 = vmul.f32 %v1570_v59, %v1554_v46 }
 0xa6c   : > { %v1575_v62 = vmul.f32 %v2039_v58, %v1571_v61  ;;  %1584 = sbr.rel (%p1901_p1) target bundleno = 2674 (0xa72), region = 113 }
 0xa6e   : > { %v1579_v5 = vadd.f32 %v2040_v60, %v1575_v62 }
 0xa70   : > { %1580 = vst.msk [vmem:[#allocation2] sm:$0xff] %vm1094_vm13, %v1579_v5 }
 0xa71   : > { %1585 = vst.msk [vmem:[%s675_s3] sm:$0xff] %vm1094_vm13, %v1579_v5 }
 0xa72 PF: > { %s2726_s17 = sld [smem:[#allocation13_spill]]  ;;  %s1599_s30 = sshll.u32 %s675_s3, 4  ;;  %s1600_s30 = int_to_ptr.vmem [resolvable:$true] %s1599_s30 }
 0xa73   : > { %s2727_s21 = sld [smem:[#allocation11_spill]] }
 0xa74   : > { %s2729_s18 = sld [smem:[#allocation31_spill]] }
 0xa78   : > { %s1903_s7 = sshll.u32 %s2726_s17, 3 }
 0xa79   : > { %s2730_s27 = sand.u32 1, %s2727_s21  }
 0xa7a   : > { %s1597_s26 = scalar_lea.hbm %s2729_s18, %s1903_s7  ;;  %s1587_s19 = scalar_lea.sflag [#allocation4], %s2730_s27 }
 0xa7b   : > { %s1601_s1 = sshll.u32 %s1597_s26, 4  ;;  %s2085_s0 = scalar_lea.hbm %s2729_s18, 16  ;;  %s1602_s1 = int_to_ptr.hbm [resolvable:$true] %s1601_s1 }
 0xa7c   : > { %s2079_s25 = sshra.s32 %s1602_s1, 4  ;;  %s2080_s25 = int_to_ptr.hbm [resolvable:$true] %s2079_s25 }
 0xa7d   : > { %s2081_s28 = scalar_lea.hbm %s2080_s25, 8  ;;  %p2086_p6 = scmp.lt.s32.totalorder %s2080_s25, %s2729_s18 }
 0xa7e   : > { %p2082_p2 = scmp.ne.s32.totalorder %s2080_s25, %s2081_s28  ;;  %p2087_p7 = scmp.lt.s32.totalorder %s2085_s0, %s2081_s28 }
 0xa80   : > { %p2083_p4 = pnand %p2082_p2, %p2324_p3  ;;  %p2088_p8 = por %p2087_p7, %p2086_p6 }
 0xa82   : > { %p2084_p5 = pneg %p2083_p4 }
 0xa84   : > { %p2089_p10 = pnand %p2088_p8, %p2084_p5 }
 0xa86   : > { %2092 = shalt.err (!%p2089_p10)
}
 0xa87   : > { %1929 = dma.vmem_to_hbm [thread:$0]  (%p2324_p3), %s1600_s30, 128, %s1602_s1, %s1587_s19  }
 0xa88 PF: > { %s2731_s29 = sld [smem:[#allocation16_spill]] }
 0xa89   : > { %s2732_s3 = sld [smem:[#allocation10_spill]] }
 0xa8e   : > { %p1935_p11 = scmp.ge.s32.totalorder %s2731_s29, 2 }
 0xa8f   : > { %s1613_s7 = sand.u32 1, %s2732_s3  }
 0xa90   : > { %p1932_p12 = pnand %p1935_p11, %p2334_p9  ;;  %s1614_s24 = scalar_lea.sflag [#allocation4], %s1613_s7 }
 0xa92   : > { %p1933_p13 = pneg %p1932_p12 }
 0xa94   : > { %2128 = dma.done.wait (%p1933_p13), %s1614_s24, 128  }
 0xa95   : > { %2130 = vsyncadd (%p1933_p13), %s1614_s24, 4294967168  ;;  %s30_s30 = sadd.s32 1, %s2731_s29   ;;  %s2734_s24 = sld [smem:[#allocation11_spill]] }
 0xa96   : > { %p27_p0 = scmp.ge.s32.totalorder %s30_s30, 6   ;;  %s2735_s25 = sld [smem:[#allocation12_spill]] }
 0xa97   : > { %s2736_s26 = sld [smem:[#allocation21_spill]] }
 0xa98   : > { %s2737_s27 = sld [smem:[#allocation14_spill]]  ;;  %29 = sbr.rel (!%p27_p0) target bundleno = 14 (0xe), region = 191 }
 0xa99   : > { %s2738_s28 = sld [smem:[#allocation15_spill]] }
 0xa9a   : > { %s2739_s29 = sld [smem:[#allocation17_spill]] }
 0xa9b   : > { %s2740_s0 = sld [smem:[#allocation19_spill]] }
 0xa9d   :  { %1620 = vsyncpa [#allocation4], 1 }
 0xa9e   :  { %1622 = vsyncpa [#allocation4 + $0x1], 1 }

</bundles_post_ra>
